<compile_context>
chip_gen: v7x
topology: tpu7x:2x2x1
jax: 0.10.0
libtpu: 0.0.40
codegen_flags: <defaults>
</compile_context>

<pallas_src>
import functools

import numpy as np
import jax
import jax.numpy as jnp
from jax.experimental import pallas as pl
from jax.experimental.pallas import tpu as pltpu


# ----------------------------- config ---------------------------------------
DIM = 32
NHEADS = 4
WINDOW_SIZE = 4
SHIFTED = True
RELATIVE_POS_EMBEDDING = True

B, N_H, N_W = 2, 8, 8          # input spatial grid (divisible by WINDOW_SIZE)

# MXU-native matmul input dtype on v5e/v6e/v7x; accumulation is always f32 and
# the softmax / bias path stays f32.
MATMUL_DTYPE = jnp.bfloat16


# ------------------------- mask / bias helpers (host, one-time) --------------
def create_mask_np(window_size, displacement, upper_lower, left_right):
    ws2 = window_size * window_size
    mask = np.zeros((ws2, ws2), dtype=np.float32)
    if upper_lower:
        mask[-displacement * window_size:, :-displacement * window_size] = -np.inf
        mask[:-displacement * window_size, -displacement * window_size:] = -np.inf
    if left_right:
        mask = mask.reshape(window_size, window_size, window_size, window_size)
        mask[:, -displacement:, :, :-displacement] = -np.inf
        mask[:, :-displacement, :, -displacement:] = -np.inf
        mask = mask.reshape(ws2, ws2)
    return mask


def get_relative_indices_np(window_size):
    idx = np.array([[x, y] for x in range(window_size) for y in range(window_size)])
    dist = idx[None, :, :] - idx[:, None, :]
    return dist + window_size - 1          # (ws^2, ws^2, 2), values in [0, 2*ws-2]


def build_stacked_bias(pos_embedding, nw_h, nw_w, batch):
    """Precompute the (B*T, B*T) additive bias, T = nw*ws^2.

    Block-diagonal: diagonal (ws^2, ws^2) block of (batch b, window w) =
    relative-position bias + shift masks for that window; every off-diagonal
    entry (other window OR other batch) = -inf so all windows of all batches
    share one big attention matrix per head.  Built ONCE on the host.
    """
    ws, ws2 = WINDOW_SIZE, WINDOW_SIZE ** 2
    nw = nw_h * nw_w
    T = nw * ws2
    BT = batch * T

    pe = np.asarray(pos_embedding, dtype=np.float32)
    if RELATIVE_POS_EMBEDDING:
        rel = get_relative_indices_np(ws)
        pos_bias = pe[rel[:, :, 0], rel[:, :, 1]]          # (ws2, ws2)
    else:
        pos_bias = pe

    disp = ws // 2
    ul = create_mask_np(ws, disp, upper_lower=True, left_right=False)
    lr = create_mask_np(ws, disp, upper_lower=False, left_right=True)

    bias = np.full((BT, BT), -np.inf, dtype=np.float32)
    for b in range(batch):
        for w in range(nw):
            r, c = divmod(w, nw_w)
            block = pos_bias.copy()
            if SHIFTED:
                if r == nw_h - 1:
                    block = block + ul
                if c == nw_w - 1:
                    block = block + lr
            s = b * T + w * ws2
            bias[s:s + ws2, s:s + ws2] = block
    return jnp.asarray(bias)                                # (BT, BT) f32


# ------------------------------ Pallas kernel --------------------------------
def fused_window_attn_kernel(x_ref, wq_ref, wk_ref, wv_ref, wout_ref, bout_ref,
                             bias_ref, o_ref, *, nheads, head_dim):
    """Single step: qkv projection + all-head window attention + out projection.

    x_ref    : (BT, C) f32     stacked (batch, window, position) tokens
    wq/wk/wv : (C, C)  bf16    (softmax scale pre-folded into wq)
    wout_ref : (C, C)  bf16    bout_ref: (1, C) f32
    bias_ref : (BT, BT) f32    block-diagonal window bias (contains -inf)
    o_ref    : (BT, C) f32
    """
    x = x_ref[...].astype(MATMUL_DTYPE)                       # (BT, C)
    bias = bias_ref[...]                                       # (BT, BT) f32

    # Three separate projections (results start at lane 0; scale folded in wq).
    # bf16 MXU inputs, f32 accumulation.
    q = jnp.dot(x, wq_ref[...], preferred_element_type=jnp.float32).astype(MATMUL_DTYPE)
    k = jnp.dot(x, wk_ref[...], preferred_element_type=jnp.float32).astype(MATMUL_DTYPE)
    v = jnp.dot(x, wv_ref[...], preferred_element_type=jnp.float32).astype(MATMUL_DTYPE)

    # Unrolled head loop (nheads=4, head_dim=8).  Per-head outputs are gathered
    # into ONE (BT, C) buffer so the output projection is a single MXU push
    # with K=C instead of nheads pushes with K=head_dim.
    head_outs = []
    for h in range(nheads):
        sl = slice(h * head_dim, (h + 1) * head_dim)
        q_h, k_h, v_h = q[:, sl], k[:, sl], v[:, sl]           # (BT, d) bf16

        dots = jax.lax.dot_general(                            # (BT, BT) f32
            q_h, k_h, (((1,), (1,)), ((), ())),
            preferred_element_type=jnp.float32,
        ) + bias

        # f32 softmax; every row has finite in-window entries -> no 0/0.
        # Exact normalization (approx reciprocal caused the previous tolerance
        # failure).
        m = jnp.max(dots, axis=-1, keepdims=True)
        p = jnp.exp(dots - m)
        attn = p / jnp.sum(p, axis=-1, keepdims=True)

        head_outs.append(
            jnp.dot(attn.astype(MATMUL_DTYPE), v_h,
                    preferred_element_type=jnp.float32))       # (BT, d) f32

    o_cat = jnp.concatenate(head_outs, axis=-1).astype(MATMUL_DTYPE)   # (BT, C)
    o_ref[...] = (jnp.dot(o_cat, wout_ref[...],
                          preferred_element_type=jnp.float32)
                  + bout_ref[...])                              # + to_out bias


def pallas_fused_window_attention(x_tokens, prep):
    """x_tokens: (B*T, C) window-partitioned, batch-stacked tokens."""
    BT, C = x_tokens.shape
    kernel = functools.partial(
        fused_window_attn_kernel, nheads=NHEADS, head_dim=C // NHEADS)
    return pl.pallas_call(
        kernel,
        out_shape=jax.ShapeDtypeStruct((BT, C), jnp.float32),
        grid=(1,),                                   # single fused step
        in_specs=[
            pl.BlockSpec((BT, C), lambda i: (0, 0)),        # activations
            pl.BlockSpec((C, C), lambda i: (0, 0)),         # w_q (scale folded)
            pl.BlockSpec((C, C), lambda i: (0, 0)),         # w_k
            pl.BlockSpec((C, C), lambda i: (0, 0)),         # w_v
            pl.BlockSpec((C, C), lambda i: (0, 0)),         # w_out
            pl.BlockSpec((1, C), lambda i: (0, 0)),         # b_out
            pl.BlockSpec((BT, BT), lambda i: (0, 0)),       # block-diag bias
        ],
        out_specs=pl.BlockSpec((BT, C), lambda i: (0, 0)),
        compiler_params=pltpu.CompilerParams(
            dimension_semantics=("arbitrary",),
        ),
    )(x_tokens, prep["w_q"], prep["w_k"], prep["w_v"], prep["w_out"],
      prep["b_out"], prep["bias"])


# --------------------------- params (module port) ----------------------------
def init_params(key):
    k1, k2, k3, k4 = jax.random.split(key, 4)
    head_dim = DIM // NHEADS
    params = {
        # nn.Linear(dim, 3*dim, bias=False): stored transposed (in, out)
        "w_qkv": jax.random.normal(k1, (DIM, 3 * DIM), jnp.float32) * (1.0 / np.sqrt(DIM)),
        # nn.Linear(dim, dim)
        "w_out": jax.random.normal(k2, (DIM, DIM), jnp.float32) * (1.0 / np.sqrt(DIM)),
        "b_out": jax.random.normal(k3, (DIM,), jnp.float32) * 0.01,
    }
    if RELATIVE_POS_EMBEDDING:
        params["pos_embedding"] = jax.random.normal(
            k4, (2 * WINDOW_SIZE - 1, 2 * WINDOW_SIZE - 1), jnp.float32)
    else:
        params["pos_embedding"] = jax.random.normal(
            k4, (WINDOW_SIZE ** 2, WINDOW_SIZE ** 2), jnp.float32)
    return params, head_dim ** (-0.5)


def prepare_params(params, scale):
    """One-time host-side prep: fold scale into w_q, split qkv, cast weights
    to the MXU input dtype, and build the stacked block-diagonal bias."""
    C = DIM
    w_qkv = params["w_qkv"]
    return {
        "w_q": (w_qkv[:, :C] * scale).astype(MATMUL_DTYPE),
        "w_k": w_qkv[:, C:2 * C].astype(MATMUL_DTYPE),
        "w_v": w_qkv[:, 2 * C:].astype(MATMUL_DTYPE),
        "w_out": params["w_out"].astype(MATMUL_DTYPE),
        "b_out": params["b_out"].reshape(1, C).astype(jnp.float32),
        "bias": build_stacked_bias(params["pos_embedding"],
                                   N_H // WINDOW_SIZE, N_W // WINDOW_SIZE, B),
    }


# --------------------------- forward (module port) ---------------------------
def window_attention_forward(x, prep):
    """Pallas forward. x: (B, n_h, n_w, DIM)."""
    ws = WINDOW_SIZE
    b, n_h, n_w, C = x.shape
    nw_h, nw_w = n_h // ws, n_w // ws
    nw, ws2 = nw_h * nw_w, ws * ws
    disp = ws // 2

    if SHIFTED:
        x = jnp.roll(x, shift=(-disp, -disp), axis=(1, 2))

    # window partition + batch stacking (cheap JAX layout glue at this size)
    xw = x.reshape(b, nw_h, ws, nw_w, ws, C)
    xw = jnp.transpose(xw, (0, 1, 3, 2, 4, 5)).reshape(b * nw * ws2, C)

    out = pallas_fused_window_attention(xw, prep)               # (B*T, C)

    # merge windows back to the spatial grid
    out = out.reshape(b, nw_h, nw_w, ws, ws, C)
    out = jnp.transpose(out, (0, 1, 3, 2, 4, 5)).reshape(b, n_h, n_w, C)

    if SHIFTED:
        out = jnp.roll(out, shift=(disp, disp), axis=(1, 2))
    return out


# --------------------------- pure-JAX reference -------------------------------
def window_attention_reference(x, w_q, w_k, w_v, w_out, b_out, pos_embedding,
                               *, dots_scale, matmul_dtype):
    """Per-window reference (structurally independent of the kernel).

    With matmul_dtype=f32 and the original weights + dots_scale=scale this is
    the exact f32 port of the PyTorch module; with matmul_dtype=bf16 and the
    prepared (scale-folded, bf16) weights + dots_scale=1 it matches the
    kernel's precision policy.
    """
    ws, h, d = WINDOW_SIZE, NHEADS, DIM // NHEADS
    b, n_h, n_w, _ = x.shape
    nw_h, nw_w = n_h // ws, n_w // ws
    nw, ws2 = nw_h * nw_w, ws * ws
    disp = ws // 2

    if SHIFTED:
        x = jnp.roll(x, shift=(-disp, -disp), axis=(1, 2))

    xf = x.reshape(-1, DIM).astype(matmul_dtype)

    def proj(w):
        return jnp.dot(xf, w.astype(matmul_dtype),
                       preferred_element_type=jnp.float32).astype(matmul_dtype)

    q, k, v = proj(w_q), proj(w_k), proj(w_v)

    def to_windows(t):
        t = t.reshape(b, nw_h, ws, nw_w, ws, h, d)
        return jnp.transpose(t, (0, 5, 1, 3, 2, 4, 6)).reshape(b, h, nw, ws2, d)

    q, k, v = map(to_windows, (q, k, v))

    dots = jnp.einsum("bhwid,bhwjd->bhwij", q, k,
                      preferred_element_type=jnp.float32) * dots_scale
    if RELATIVE_POS_EMBEDDING:
        rel = get_relative_indices_np(ws)
        dots = dots + pos_embedding[rel[:, :, 0], rel[:, :, 1]]
    else:
        dots = dots + pos_embedding
    if SHIFTED:
        ul = jnp.asarray(create_mask_np(ws, disp, True, False))
        lr = jnp.asarray(create_mask_np(ws, disp, False, True))
        dots = dots.at[:, :, -nw_w:].add(ul)
        dots = dots.at[:, :, nw_w - 1::nw_w].add(lr)

    attn = jax.nn.softmax(dots, axis=-1)
    out = jnp.einsum("bhwij,bhwjd->bhwid", attn.astype(matmul_dtype), v,
                     preferred_element_type=jnp.float32)

    out = out.reshape(b, h, nw_h, nw_w, ws, ws, d)
    out = jnp.transpose(out, (0, 2, 4, 3, 5, 1, 6)).reshape(-1, DIM)
    out = (jnp.dot(out.astype(matmul_dtype), w_out.astype(matmul_dtype),
                   preferred_element_type=jnp.float32)
           + b_out.reshape(-1)).reshape(b, n_h, n_w, DIM)

    if SHIFTED:
        out = jnp.roll(out, shift=(disp, disp), axis=(1, 2))
    return out


# ----------------------------------- main ------------------------------------
if __name__ == "__main__":
    key = jax.random.PRNGKey(0)
    kx, kp = jax.random.split(key)
    x = jax.random.normal(kx, (B, N_H, N_W, DIM), jnp.float32)

    params, scale = init_params(kp)
    prep = prepare_params(params, scale)          # one-time host-side prep

    fwd = jax.jit(window_attention_forward)
    out = jax.block_until_ready(fwd(x, prep))

    C = DIM
    # (1) Tight check: pure-JAX per-window reference with the SAME precision
    #     policy as the kernel (bf16 MXU operands, f32 accumulate / softmax).
    #     Tolerance leaves headroom for MXU-vs-XLA accumulation-order ulps
    #     crossing bf16 rounding boundaries on intermediate casts.
    ref_matched = jax.block_until_ready(window_attention_reference(
        x, prep["w_q"], prep["w_k"], prep["w_v"], prep["w_out"], prep["b_out"],
        params["pos_embedding"], dots_scale=1.0, matmul_dtype=MATMUL_DTYPE))
    np.testing.assert_allclose(np.asarray(out), np.asarray(ref_matched),
                               rtol=2e-2, atol=2e-2)

    # (2) Coarse check against the exact f32 module numerics (original fused
    #     w_qkv, scale applied to the logits): bounds total bf16 drift.
    ref_f32 = jax.block_until_ready(window_attention_reference(
        x, params["w_qkv"][:, :C], params["w_qkv"][:, C:2 * C],
        params["w_qkv"][:, 2 * C:], params["w_out"], params["b_out"],
        params["pos_embedding"], dots_scale=scale, matmul_dtype=jnp.float32))
    np.testing.assert_allclose(np.asarray(out), np.asarray(ref_f32),
                               rtol=1e-1, atol=1e-1)

    print("KERNEL_OK")
</pallas_src>

<mosaic_0001>
module attributes {stable_mosaic.version = 11 : i64} {
  func.func @fused_window_attn_kernel(%arg0: i32, %arg1: memref<128x32xf32, #tpu.memory_space<vmem>>, %arg2: memref<32x32xbf16, #tpu.memory_space<vmem>>, %arg3: memref<32x32xbf16, #tpu.memory_space<vmem>>, %arg4: memref<32x32xbf16, #tpu.memory_space<vmem>>, %arg5: memref<32x32xbf16, #tpu.memory_space<vmem>>, %arg6: memref<1x32xf32, #tpu.memory_space<vmem>>, %arg7: memref<128x128xf32, #tpu.memory_space<vmem>>, %arg8: memref<128x32xf32, #tpu.memory_space<vmem>>) attributes {dimension_semantics = [#tpu.dimension_semantics<arbitrary>], iteration_bounds = array<i64: 1>, scalar_prefetch = 0 : i64, scratch_operands = 0 : i64, tpu.core_type = #tpu.core_type<tc>, window_params = [{pipeline_mode = #tpu.pipeline_mode<synchronous>, transform_indices = @transform_0, window_bounds = array<i64: 128, 32>}, {pipeline_mode = #tpu.pipeline_mode<synchronous>, transform_indices = @transform_1, window_bounds = array<i64: 32, 32>}, {pipeline_mode = #tpu.pipeline_mode<synchronous>, transform_indices = @transform_2, window_bounds = array<i64: 32, 32>}, {pipeline_mode = #tpu.pipeline_mode<synchronous>, transform_indices = @transform_3, window_bounds = array<i64: 32, 32>}, {pipeline_mode = #tpu.pipeline_mode<synchronous>, transform_indices = @transform_4, window_bounds = array<i64: 32, 32>}, {pipeline_mode = #tpu.pipeline_mode<synchronous>, transform_indices = @transform_5, window_bounds = array<i64: 1, 32>}, {pipeline_mode = #tpu.pipeline_mode<synchronous>, transform_indices = @transform_6, window_bounds = array<i64: 128, 128>}, {pipeline_mode = #tpu.pipeline_mode<synchronous>, transform_indices = @transform_7, window_bounds = array<i64: 128, 32>}]} {
    %c0 = arith.constant 0 : index
    %c0_0 = arith.constant 0 : index
    %0 = vector.load %arg1[%c0, %c0_0] : memref<128x32xf32, #tpu.memory_space<vmem>>, vector<128x32xf32>
    %1 = arith.truncf %0 : vector<128x32xf32> to vector<128x32xbf16>
    %c0_1 = arith.constant 0 : index
    %c0_2 = arith.constant 0 : index
    %2 = vector.load %arg7[%c0_1, %c0_2] : memref<128x128xf32, #tpu.memory_space<vmem>>, vector<128x128xf32>
    %c0_3 = arith.constant 0 : index
    %c0_4 = arith.constant 0 : index
    %3 = vector.load %arg2[%c0_3, %c0_4] : memref<32x32xbf16, #tpu.memory_space<vmem>>, vector<32x32xbf16>
    %cst = arith.constant dense<0.000000e+00> : vector<128x32xf32>
    %4 = tpu.matmul %1, %3, %cst {dimension_numbers = #tpu.dot_dimension_numbers<[1], [0], [0], [1], [0, 0, 1, 1], [], []>} : vector<128x32xbf16>, vector<32x32xbf16>, vector<128x32xf32> -> vector<128x32xf32>
    %5 = arith.truncf %4 : vector<128x32xf32> to vector<128x32xbf16>
    %c0_5 = arith.constant 0 : index
    %c0_6 = arith.constant 0 : index
    %6 = vector.load %arg3[%c0_5, %c0_6] : memref<32x32xbf16, #tpu.memory_space<vmem>>, vector<32x32xbf16>
    %cst_7 = arith.constant dense<0.000000e+00> : vector<128x32xf32>
    %7 = tpu.matmul %1, %6, %cst_7 {dimension_numbers = #tpu.dot_dimension_numbers<[1], [0], [0], [1], [0, 0, 1, 1], [], []>} : vector<128x32xbf16>, vector<32x32xbf16>, vector<128x32xf32> -> vector<128x32xf32>
    %8 = arith.truncf %7 : vector<128x32xf32> to vector<128x32xbf16>
    %c0_8 = arith.constant 0 : index
    %c0_9 = arith.constant 0 : index
    %9 = vector.load %arg4[%c0_8, %c0_9] : memref<32x32xbf16, #tpu.memory_space<vmem>>, vector<32x32xbf16>
    %cst_10 = arith.constant dense<0.000000e+00> : vector<128x32xf32>
    %10 = tpu.matmul %1, %9, %cst_10 {dimension_numbers = #tpu.dot_dimension_numbers<[1], [0], [0], [1], [0, 0, 1, 1], [], []>} : vector<128x32xbf16>, vector<32x32xbf16>, vector<128x32xf32> -> vector<128x32xf32>
    %11 = arith.truncf %10 : vector<128x32xf32> to vector<128x32xbf16>
    %12 = vector.extract_strided_slice %5 {offsets = [0, 0], sizes = [128, 8], strides = [1, 1]} : vector<128x32xbf16> to vector<128x8xbf16>
    %13 = vector.extract_strided_slice %8 {offsets = [0, 0], sizes = [128, 8], strides = [1, 1]} : vector<128x32xbf16> to vector<128x8xbf16>
    %14 = vector.extract_strided_slice %11 {offsets = [0, 0], sizes = [128, 8], strides = [1, 1]} : vector<128x32xbf16> to vector<128x8xbf16>
    %cst_11 = arith.constant dense<0.000000e+00> : vector<128x128xf32>
    %15 = tpu.matmul %12, %13, %cst_11 {dimension_numbers = #tpu.dot_dimension_numbers<[1], [1], [0], [0], [0, 0, 1, 0], [], []>} : vector<128x8xbf16>, vector<128x8xbf16>, vector<128x128xf32> -> vector<128x128xf32>
    %16 = arith.addf %15, %2 : vector<128x128xf32>
    %cst_12 = arith.constant dense<0xFF800000> : vector<128xf32>
    %17 = vector.multi_reduction <maximumf>, %16, %cst_12 [1] : vector<128x128xf32> to vector<128xf32>
    %18 = vector.shape_cast %17 : vector<128xf32> to vector<128x1xf32>
    %19 = vector.broadcast %18 : vector<128x1xf32> to vector<128x128xf32>
    %20 = arith.subf %16, %19 : vector<128x128xf32>
    %21 = math.exp %20 : vector<128x128xf32>
    %cst_13 = arith.constant dense<0.000000e+00> : vector<128xf32>
    %22 = vector.multi_reduction <add>, %21, %cst_13 [1] : vector<128x128xf32> to vector<128xf32>
    %23 = vector.shape_cast %22 : vector<128xf32> to vector<128x1xf32>
    %24 = vector.broadcast %23 : vector<128x1xf32> to vector<128x128xf32>
    %25 = arith.divf %21, %24 : vector<128x128xf32>
    %26 = arith.truncf %25 : vector<128x128xf32> to vector<128x128xbf16>
    %cst_14 = arith.constant dense<0.000000e+00> : vector<128x8xf32>
    %27 = tpu.matmul %26, %14, %cst_14 {dimension_numbers = #tpu.dot_dimension_numbers<[1], [0], [0], [1], [0, 0, 1, 1], [], []>} : vector<128x128xbf16>, vector<128x8xbf16>, vector<128x8xf32> -> vector<128x8xf32>
    %28 = vector.extract_strided_slice %5 {offsets = [0, 8], sizes = [128, 8], strides = [1, 1]} : vector<128x32xbf16> to vector<128x8xbf16>
    %29 = vector.extract_strided_slice %8 {offsets = [0, 8], sizes = [128, 8], strides = [1, 1]} : vector<128x32xbf16> to vector<128x8xbf16>
    %30 = vector.extract_strided_slice %11 {offsets = [0, 8], sizes = [128, 8], strides = [1, 1]} : vector<128x32xbf16> to vector<128x8xbf16>
    %cst_15 = arith.constant dense<0.000000e+00> : vector<128x128xf32>
    %31 = tpu.matmul %28, %29, %cst_15 {dimension_numbers = #tpu.dot_dimension_numbers<[1], [1], [0], [0], [0, 0, 1, 0], [], []>} : vector<128x8xbf16>, vector<128x8xbf16>, vector<128x128xf32> -> vector<128x128xf32>
    %32 = arith.addf %31, %2 : vector<128x128xf32>
    %cst_16 = arith.constant dense<0xFF800000> : vector<128xf32>
    %33 = vector.multi_reduction <maximumf>, %32, %cst_16 [1] : vector<128x128xf32> to vector<128xf32>
    %34 = vector.shape_cast %33 : vector<128xf32> to vector<128x1xf32>
    %35 = vector.broadcast %34 : vector<128x1xf32> to vector<128x128xf32>
    %36 = arith.subf %32, %35 : vector<128x128xf32>
    %37 = math.exp %36 : vector<128x128xf32>
    %cst_17 = arith.constant dense<0.000000e+00> : vector<128xf32>
    %38 = vector.multi_reduction <add>, %37, %cst_17 [1] : vector<128x128xf32> to vector<128xf32>
    %39 = vector.shape_cast %38 : vector<128xf32> to vector<128x1xf32>
    %40 = vector.broadcast %39 : vector<128x1xf32> to vector<128x128xf32>
    %41 = arith.divf %37, %40 : vector<128x128xf32>
    %42 = arith.truncf %41 : vector<128x128xf32> to vector<128x128xbf16>
    %cst_18 = arith.constant dense<0.000000e+00> : vector<128x8xf32>
    %43 = tpu.matmul %42, %30, %cst_18 {dimension_numbers = #tpu.dot_dimension_numbers<[1], [0], [0], [1], [0, 0, 1, 1], [], []>} : vector<128x128xbf16>, vector<128x8xbf16>, vector<128x8xf32> -> vector<128x8xf32>
    %44 = vector.extract_strided_slice %5 {offsets = [0, 16], sizes = [128, 8], strides = [1, 1]} : vector<128x32xbf16> to vector<128x8xbf16>
    %45 = vector.extract_strided_slice %8 {offsets = [0, 16], sizes = [128, 8], strides = [1, 1]} : vector<128x32xbf16> to vector<128x8xbf16>
    %46 = vector.extract_strided_slice %11 {offsets = [0, 16], sizes = [128, 8], strides = [1, 1]} : vector<128x32xbf16> to vector<128x8xbf16>
    %cst_19 = arith.constant dense<0.000000e+00> : vector<128x128xf32>
    %47 = tpu.matmul %44, %45, %cst_19 {dimension_numbers = #tpu.dot_dimension_numbers<[1], [1], [0], [0], [0, 0, 1, 0], [], []>} : vector<128x8xbf16>, vector<128x8xbf16>, vector<128x128xf32> -> vector<128x128xf32>
    %48 = arith.addf %47, %2 : vector<128x128xf32>
    %cst_20 = arith.constant dense<0xFF800000> : vector<128xf32>
    %49 = vector.multi_reduction <maximumf>, %48, %cst_20 [1] : vector<128x128xf32> to vector<128xf32>
    %50 = vector.shape_cast %49 : vector<128xf32> to vector<128x1xf32>
    %51 = vector.broadcast %50 : vector<128x1xf32> to vector<128x128xf32>
    %52 = arith.subf %48, %51 : vector<128x128xf32>
    %53 = math.exp %52 : vector<128x128xf32>
    %cst_21 = arith.constant dense<0.000000e+00> : vector<128xf32>
    %54 = vector.multi_reduction <add>, %53, %cst_21 [1] : vector<128x128xf32> to vector<128xf32>
    %55 = vector.shape_cast %54 : vector<128xf32> to vector<128x1xf32>
    %56 = vector.broadcast %55 : vector<128x1xf32> to vector<128x128xf32>
    %57 = arith.divf %53, %56 : vector<128x128xf32>
    %58 = arith.truncf %57 : vector<128x128xf32> to vector<128x128xbf16>
    %cst_22 = arith.constant dense<0.000000e+00> : vector<128x8xf32>
    %59 = tpu.matmul %58, %46, %cst_22 {dimension_numbers = #tpu.dot_dimension_numbers<[1], [0], [0], [1], [0, 0, 1, 1], [], []>} : vector<128x128xbf16>, vector<128x8xbf16>, vector<128x8xf32> -> vector<128x8xf32>
    %60 = vector.extract_strided_slice %5 {offsets = [0, 24], sizes = [128, 8], strides = [1, 1]} : vector<128x32xbf16> to vector<128x8xbf16>
    %61 = vector.extract_strided_slice %8 {offsets = [0, 24], sizes = [128, 8], strides = [1, 1]} : vector<128x32xbf16> to vector<128x8xbf16>
    %62 = vector.extract_strided_slice %11 {offsets = [0, 24], sizes = [128, 8], strides = [1, 1]} : vector<128x32xbf16> to vector<128x8xbf16>
    %cst_23 = arith.constant dense<0.000000e+00> : vector<128x128xf32>
    %63 = tpu.matmul %60, %61, %cst_23 {dimension_numbers = #tpu.dot_dimension_numbers<[1], [1], [0], [0], [0, 0, 1, 0], [], []>} : vector<128x8xbf16>, vector<128x8xbf16>, vector<128x128xf32> -> vector<128x128xf32>
    %64 = arith.addf %63, %2 : vector<128x128xf32>
    %cst_24 = arith.constant dense<0xFF800000> : vector<128xf32>
    %65 = vector.multi_reduction <maximumf>, %64, %cst_24 [1] : vector<128x128xf32> to vector<128xf32>
    %66 = vector.shape_cast %65 : vector<128xf32> to vector<128x1xf32>
    %67 = vector.broadcast %66 : vector<128x1xf32> to vector<128x128xf32>
    %68 = arith.subf %64, %67 : vector<128x128xf32>
    %69 = math.exp %68 : vector<128x128xf32>
    %cst_25 = arith.constant dense<0.000000e+00> : vector<128xf32>
    %70 = vector.multi_reduction <add>, %69, %cst_25 [1] : vector<128x128xf32> to vector<128xf32>
    %71 = vector.shape_cast %70 : vector<128xf32> to vector<128x1xf32>
    %72 = vector.broadcast %71 : vector<128x1xf32> to vector<128x128xf32>
    %73 = arith.divf %69, %72 : vector<128x128xf32>
    %74 = arith.truncf %73 : vector<128x128xf32> to vector<128x128xbf16>
    %cst_26 = arith.constant dense<0.000000e+00> : vector<128x8xf32>
    %75 = tpu.matmul %74, %62, %cst_26 {dimension_numbers = #tpu.dot_dimension_numbers<[1], [0], [0], [1], [0, 0, 1, 1], [], []>} : vector<128x128xbf16>, vector<128x8xbf16>, vector<128x8xf32> -> vector<128x8xf32>
    %76 = tpu.concatenate %27, %43, %59, %75 in 1 : vector<128x8xf32>, vector<128x8xf32>, vector<128x8xf32>, vector<128x8xf32> -> vector<128x32xf32>
    %77 = arith.truncf %76 : vector<128x32xf32> to vector<128x32xbf16>
    %c0_27 = arith.constant 0 : index
    %c0_28 = arith.constant 0 : index
    %78 = vector.load %arg5[%c0_27, %c0_28] : memref<32x32xbf16, #tpu.memory_space<vmem>>, vector<32x32xbf16>
    %cst_29 = arith.constant dense<0.000000e+00> : vector<128x32xf32>
    %79 = tpu.matmul %77, %78, %cst_29 {dimension_numbers = #tpu.dot_dimension_numbers<[1], [0], [0], [1], [0, 0, 1, 1], [], []>} : vector<128x32xbf16>, vector<32x32xbf16>, vector<128x32xf32> -> vector<128x32xf32>
    %c0_30 = arith.constant 0 : index
    %c0_31 = arith.constant 0 : index
    %80 = vector.load %arg6[%c0_30, %c0_31] : memref<1x32xf32, #tpu.memory_space<vmem>>, vector<1x32xf32>
    %81 = vector.broadcast %80 : vector<1x32xf32> to vector<128x32xf32>
    %82 = arith.addf %79, %81 : vector<128x32xf32>
    %c0_32 = arith.constant 0 : index
    %c0_33 = arith.constant 0 : index
    %83 = vector.load %arg8[%c0_32, %c0_33] : memref<128x32xf32, #tpu.memory_space<vmem>>, vector<128x32xf32>
    tpu.vector_store %arg8[%c0_32, %c0_33], %82 {strides = array<i32>} : memref<128x32xf32, #tpu.memory_space<vmem>>, vector<128x32xf32>,
    return
  }
  func.func @transform_0(%arg0: i32) -> (i32, i32) {
    %c0_i32 = arith.constant 0 : i32
    %c0_i32_0 = arith.constant 0 : i32
    %c0_i32_1 = arith.constant 0 : i32
    return %c0_i32, %c0_i32_0 : i32, i32
  }
  func.func @transform_1(%arg0: i32) -> (i32, i32) {
    %c0_i32 = arith.constant 0 : i32
    %c0_i32_0 = arith.constant 0 : i32
    %c0_i32_1 = arith.constant 0 : i32
    return %c0_i32, %c0_i32_0 : i32, i32
  }
  func.func @transform_2(%arg0: i32) -> (i32, i32) {
    %c0_i32 = arith.constant 0 : i32
    %c0_i32_0 = arith.constant 0 : i32
    %c0_i32_1 = arith.constant 0 : i32
    return %c0_i32, %c0_i32_0 : i32, i32
  }
  func.func @transform_3(%arg0: i32) -> (i32, i32) {
    %c0_i32 = arith.constant 0 : i32
    %c0_i32_0 = arith.constant 0 : i32
    %c0_i32_1 = arith.constant 0 : i32
    return %c0_i32, %c0_i32_0 : i32, i32
  }
  func.func @transform_4(%arg0: i32) -> (i32, i32) {
    %c0_i32 = arith.constant 0 : i32
    %c0_i32_0 = arith.constant 0 : i32
    %c0_i32_1 = arith.constant 0 : i32
    return %c0_i32, %c0_i32_0 : i32, i32
  }
  func.func @transform_5(%arg0: i32) -> (i32, i32) {
    %c0_i32 = arith.constant 0 : i32
    %c0_i32_0 = arith.constant 0 : i32
    %c0_i32_1 = arith.constant 0 : i32
    return %c0_i32, %c0_i32_0 : i32, i32
  }
  func.func @transform_6(%arg0: i32) -> (i32, i32) {
    %c0_i32 = arith.constant 0 : i32
    %c0_i32_0 = arith.constant 0 : i32
    %c0_i32_1 = arith.constant 0 : i32
    return %c0_i32, %c0_i32_0 : i32, i32
  }
  func.func @transform_7(%arg0: i32) -> (i32, i32) {
    %c0_i32 = arith.constant 0 : i32
    %c0_i32_0 = arith.constant 0 : i32
    %c0_i32_1 = arith.constant 0 : i32
    return %c0_i32, %c0_i32_0 : i32, i32
  }
}

</mosaic_0001>

<bundles_post_ra>
// kernel: window_attention_forward.1
= control target key start
LH: loop header
LB: loop body
LE: loop exit
PB: predicated region body
PF: predicated region fallthrough
CT: control target
= control target key end

     0   :  { %vm83_vm0 = vcmask 261120   ;;  %vm455_vm1 = vcmask 64512   ;;  %s3654_s24 = smov 112   ;;  %s3657_s30 = smov 16   ;;  %vm2432_vm2 = vcmask 130048   ;;  %vm2449_vm3 = vcmask 195584   ;;  %s5194_s2 = inlined_call_operand.vmem [shape: bf16[32,32], index: 2, kind: input, shape index: {}]   ;;  %s5195_s0 = inlined_call_operand.vmem [shape: f32[128,32], index: 0, kind: input, shape index: {}]   ;;  %s5196_s1 = inlined_call_operand.vmem [shape: bf16[32,32], index: 1, kind: input, shape index: {}]   ;;  %s5197_s3 = inlined_call_operand.vmem [shape: bf16[32,32], index: 3, kind: input, shape index: {}]   ;;  %s5198_s6 = inlined_call_operand.vmem [shape: f32[128,128], index: 6, kind: input, shape index: {}]   ;;  %s5199_s4 = inlined_call_operand.vmem [shape: bf16[32,32], index: 4, kind: input, shape index: {}]   ;;  %s5200_s5 = inlined_call_operand.vmem [shape: f32[1,32], index: 5, kind: input, shape index: {}]   ;;  %s5201_s7 = inlined_call_operand.vmem [shape: f32[128,32], index: 7, kind: output, shape index: {}]  }
   0x1   :  { %v3373_v0 = vld [vmem:[%s5194_s2] sm:$0xff]   ;;  %v3374_v1 = vld [vmem:[%s5194_s2 + $0x8] sm:$0xff]   ;;  %v29_v5 = vld [vmem:[%s5195_s0 + $0x10] sm:$0xff]  ;;  %s3658_s11 = smov 24  }
   0x2   :  { %2899 = vmatprep.subr.bf16.mxu1 %v3373_v0  ;;  %v27_v2 = vld [vmem:[%s5195_s0] sm:$0xff]  ;;  %v28_v3 = vld [vmem:[%s5195_s0 + $0x8] sm:$0xff]  ;;  %v30_v6 = vld [vmem:[%s5195_s0 + $0x18] sm:$0xff] }
   0x3   :  { %2900 = vmatpush3.bf16.msra.mxu1 %v3373_v0  ;;  %v43_v4 = vpack.c.bf16 %v28_v3, %v27_v2  ;;  %v31_v7 = vld [vmem:[%s5195_s0 + $0x20] sm:$0xff]  ;;  %v32_v8 = vld [vmem:[%s5195_s0 + $0x28] sm:$0xff]  ;;  %v44_v9 = vpack.c.bf16 %v30_v6, %v29_v5  ;;  %v33_v13 = vld [vmem:[%s5195_s0 + $0x30] sm:$0xff] }
   0x4   :  { %2901 = vmatprep.subr.bf16.mxu1 %v3374_v1  ;;  %v45_v10 = vpack.c.bf16 %v32_v8, %v31_v7  ;;  %v3375_v11 = vld [vmem:[%s5196_s1] sm:$0xff]   ;;  %v3376_v12 = vld [vmem:[%s5196_s1 + $0x8] sm:$0xff]   ;;  %v34_v14 = vld [vmem:[%s5195_s0 + $0x38] sm:$0xff] }
   0x5   :  { %2903 = vmatprep.mubr.msk.bf16.mxu1 %vm83_vm0, %v43_v4  ;;  %2883 = vmatprep.mubr.msk.bf16.mxu0 %vm83_vm0, %v43_v4  ;;  %v3377_v15 = vld [vmem:[%s5197_s3] sm:$0xff]   ;;  %v36_v17 = vld [vmem:[%s5195_s0 + $0x48] sm:$0xff]  ;;  %v46_v18 = vpack.c.bf16 %v34_v14, %v33_v13  ;;  %v37_v21 = vld [vmem:[%s5195_s0 + $0x50] sm:$0xff] }
   0x6   :  { %2879 = vmatprep.subr.bf16.mxu0 %v3375_v11  ;;  %v35_v16 = vld [vmem:[%s5195_s0 + $0x40] sm:$0xff]  ;;  %v3378_v20 = vld [vmem:[%s5197_s3 + $0x8] sm:$0xff]   ;;  %v38_v22 = vld [vmem:[%s5195_s0 + $0x58] sm:$0xff] }
   0x7   :  { %2902 = vmatpush3.bf16.msra.mxu1 %v3374_v1  ;;  %2880 = vmatpush3.bf16.msra.mxu0 %v3375_v11  ;;  %v47_v19 = vpack.c.bf16 %v36_v17, %v35_v16  ;;  %v39_v23 = vld [vmem:[%s5195_s0 + $0x60] sm:$0xff]  ;;  %v40_v24 = vld [vmem:[%s5195_s0 + $0x68] sm:$0xff]  ;;  %v48_v25 = vpack.c.bf16 %v38_v22, %v37_v21  ;;  %v41_v27 = vld [vmem:[%s5195_s0 + $0x70] sm:$0xff] }
   0x8   :  { %2881 = vmatprep.subr.bf16.mxu0 %v3376_v12  ;;  %v49_v26 = vpack.c.bf16 %v40_v24, %v39_v23  ;;  %v42_v28 = vld [vmem:[%s5195_s0 + $0x78] sm:$0xff]  ;;  %s3653_s0 = smov 120  }
   0x9   :  { %v50_v29 = vpack.c.bf16 %v42_v28, %v41_v27 }
   0xa   :  { %2904 = vmatmul.mubr.msk.bf16.vlgmr.msra.gmra.mrb[0].mxu1 %vm83_vm0, %v44_v9 }
   0xb   :  { %2907 = vmatprep.mubr.msk.bf16.mxu1 %vm83_vm0, %v45_v10  ;;  %2882 = vmatpush3.bf16.msra.mxu0 %v3376_v12 }
   0xc   :  { %2919 = vmatprep.subr.bf16.mxu0 %v3377_v15 }
   0xe   :  { %2884 = vmatmul.mubr.msk.bf16.vlgmr.msra.gmra.mrb[0].mxu0 %vm83_vm0, %v44_v9 }
   0xf   :  { %2887 = vmatprep.mubr.msk.bf16.mxu0 %vm83_vm0, %v45_v10  ;;  %2920 = vmatpush3.bf16.msra.mxu0 %v3377_v15 }
  0x10   :  { %2921 = vmatprep.subr.bf16.mxu0 %v3378_v20 }
  0x12   :  { %2908 = vmatmul.mubr.msk.bf16.gmra.mrb[4].mxu1 %vm83_vm0, %v46_v18 }
  0x13   :  { %2911 = vmatprep.mubr.msk.bf16.mxu1 %vm83_vm0, %v47_v19  ;;  %2922 = vmatpush3.bf16.msra.mxu0 %v3378_v20 }
  0x16   :  { %2888 = vmatmul.mubr.msk.bf16.gmra.mrb[4].mxu0 %vm83_vm0, %v46_v18 }
  0x17   :  { %2891 = vmatprep.mubr.msk.bf16.mxu0 %vm83_vm0, %v47_v19 }
  0x1a   :  { %2912 = vmatmul.mubr.msk.bf16.gmra.mrb[8].mxu1 %vm83_vm0, %v48_v25 }
  0x1b   :  { %2915 = vmatprep.mubr.msk.bf16.mxu1 %vm83_vm0, %v49_v26 }
  0x1e   :  { %2892 = vmatmul.mubr.msk.bf16.gmra.mrb[8].mxu0 %vm83_vm0, %v48_v25 }
  0x1f   :  { %2895 = vmatprep.mubr.msk.bf16.mxu0 %vm83_vm0, %v49_v26 }
  0x22   :  { %2916 = vmatmul.mubr.msk.bf16.gmra.mrb[12].mxu1 %vm83_vm0, %v50_v29 }
  0x26   :  { %2896 = vmatmul.mubr.msk.bf16.gmra.mrb[12].mxu0 %vm83_vm0, %v50_v29 }
  0x27   :  { %2923 = vmatprep.mubr.msk.bf16.mxu0 %vm83_vm0, %v43_v4 }
  0x2e   :  { %2924 = vmatmul.mubr.msk.bf16.vlgmr.msra.gmra.mrb[16].mxu0 %vm83_vm0, %v44_v9 }
  0x2f   :  { %2927 = vmatprep.mubr.msk.bf16.mxu0 %vm83_vm0, %v45_v10 }
  0x36   :  { %2928 = vmatmul.mubr.msk.bf16.gmra.mrb[20].mxu0 %vm83_vm0, %v46_v18 }
  0x37   :  { %2931 = vmatprep.mubr.msk.bf16.mxu0 %vm83_vm0, %v47_v19 }
  0x3e   :  { %2932 = vmatmul.mubr.msk.bf16.gmra.mrb[24].mxu0 %vm83_vm0, %v48_v25 }
  0x3f   :  { %2935 = vmatprep.mubr.msk.bf16.mxu0 %vm83_vm0, %v49_v26 }
  0x46   :  { %2936 = vmatmul.mubr.msk.bf16.gmra.mrb[28].mxu0 %vm83_vm0, %v50_v29 }
  0xdd   :  { %v2905_v30 = vpop.f32.mrb[0].mxu1 }
  0xde   :  { %v263_v31 = vpop.f32.mrb[1].mxu1 }
  0xdf   :  { %v2906_v32 = vpop.f32.mrb[2].mxu1 }
  0xe0   :  { %v3789_v33 = vpack.c.bf16 %v2906_v32, %v2905_v30  ;;  %v266_v34 = vpop.f32.mrb[3].mxu1 }
  0xe1   :  { %v3791_v35 = vpack.c.bf16 %v266_v34, %v263_v31  ;;  %v2885_v37 = vpop.f32.mrb[0].mxu0 }
  0xe2   :  { %884 = vrot.lane.b32.xlu1 %v3789_v33, %s3653_s0  ;;  %v142_v39 = vpop.f32.mrb[1].mxu0  ;;  %v484_v49 = vsel %vm455_vm1, %v3789_v33, 0 }
  0xe3   :  { %882 = vrot.lane.b32.xlu0 %v3791_v35, %s3653_s0  ;;  %3215 = vmatprep.subr.msk.bf16.mxu1 %vm455_vm1, %v3791_v35  ;;  %v481_v36 = vsel %vm455_vm1, %v3791_v35, 0  ;;  %v2886_v41 = vpop.f32.mrb[2].mxu0 }
  0xe4   :  { %2940 = vmatpush3.bf16.xpose.msra.mxu1 %v481_v36  ;;  %v3803_v43 = vpack.c.bf16 %v2886_v41, %v2885_v37  ;;  %v145_v44 = vpop.f32.mrb[3].mxu0 }
  0xe5   :  { %3216 = vmatprep.subr.msk.bf16.mxu1 %vm455_vm1, %v3789_v33  ;;  %v2909_v38 = vpop.f32.mrb[4].mxu1  ;;  %v3807_v47 = vpack.c.bf16 %v145_v44, %v142_v39 }
  0xe6   :  { %v279_v40 = vpop.f32.mrb[5].mxu1 }
  0xe7   :  { %v2910_v42 = vpop.f32.mrb[6].mxu1  ;;  %2955 = vmatprep.mubr.msk.bf16.mxu1 %vm455_vm1, %v3807_v47 }
  0xe8   :  { %v3805_v45 = vpack.c.bf16 %v2910_v42, %v2909_v38  ;;  %v282_v46 = vpop.f32.mrb[7].mxu1 }
  0xe9   :  { %v3809_v48 = vpack.c.bf16 %v282_v46, %v279_v40  ;;  %v2889_v50 = vpop.f32.mrb[4].mxu0 }
  0xea   :  { %5241 = vst [vmem:[#allocation2_spill] sm:$0xff] %v3805_v45  ;;  %v158_v52 = vpop.f32.mrb[5].mxu0  ;;  %v490_v11 = vsel %vm455_vm1, %v3805_v45, 0 }
  0xeb   :  { %5242 = vst [vmem:[#allocation3_spill] sm:$0xff] %v3809_v48  ;;  %v2890_v54 = vpop.f32.mrb[6].mxu0  ;;  %v487_v62 = vsel %vm455_vm1, %v3809_v48, 0 }
  0xec   :  { %2942 = vmatpush3.bf16.xpose.msra.mxu1 %v484_v49  ;;  %v3817_v56 = vpack.c.bf16 %v2890_v54, %v2889_v50  ;;  %v161_v57 = vpop.f32.mrb[7].mxu0  ;;  %v3917_v54 = vld [vmem:[%s5198_s6] sm:$0xff] }
  0xed   :  { %3217 = vmatprep.subr.msk.bf16.mxu1 %vm455_vm1, %v3809_v48  ;;  %v2913_v51 = vpop.f32.mrb[8].mxu1  ;;  %v3821_v60 = vpack.c.bf16 %v161_v57, %v158_v52 }
  0xee   :  { %v295_v53 = vpop.f32.mrb[9].mxu1 }
  0xef   :  { %v2914_v55 = vpop.f32.mrb[10].mxu1 }
  0xf0   :  { %v3819_v58 = vpack.c.bf16 %v2914_v55, %v2913_v51  ;;  %v298_v59 = vpop.f32.mrb[11].mxu1 }
  0xf1   :  { %v3823_v61 = vpack.c.bf16 %v298_v59, %v295_v53  ;;  %v2893_v63 = vpop.f32.mrb[8].mxu0  ;;  %v3912_v53 = vld [vmem:[%s5198_s6 + $0x10] sm:$0xff] }
  0xf2   :  { %5243 = vst [vmem:[#allocation4_spill] sm:$0xff] %v3819_v58  ;;  %v174_v1 = vpop.f32.mrb[9].mxu0  ;;  %v496_v25 = vsel %vm455_vm1, %v3819_v58, 0 }
  0xf3   :  { %5244 = vst [vmem:[#allocation5_spill] sm:$0xff] %v3823_v61  ;;  %v2894_v3 = vpop.f32.mrb[10].mxu0  ;;  %v493_v18 = vsel %vm455_vm1, %v3823_v61, 0 }
  0xf4   :  { %2944 = vmatpush3.bf16.xpose.msra.mxu1 %v487_v62  ;;  %v3829_v5 = vpack.c.bf16 %v2894_v3, %v2893_v63  ;;  %v177_v6 = vpop.f32.mrb[11].mxu0  ;;  %v3928_v63 = vld [vmem:[%s5198_s6 + $0x18] sm:$0xff] }
  0xf5   :  { %3218 = vmatprep.subr.msk.bf16.mxu1 %vm455_vm1, %v3805_v45  ;;  %v2917_v0 = vpop.f32.mrb[12].mxu1  ;;  %v3833_v9 = vpack.c.bf16 %v177_v6, %v174_v1  ;;  %v3946_v6 = vld [vmem:[%s5198_s6 + $0x30] sm:$0xff] }
  0xf6   :  { %v311_v2 = vpop.f32.mrb[13].mxu1 }
  0xf7   :  { %v2918_v4 = vpop.f32.mrb[14].mxu1 }
  0xf8   :  { %v3831_v7 = vpack.c.bf16 %v2918_v4, %v2917_v0  ;;  %v314_v8 = vpop.f32.mrb[15].mxu1 }
  0xf9   :  { %v3835_v10 = vpack.c.bf16 %v314_v8, %v311_v2  ;;  %v2897_v12 = vpop.f32.mrb[12].mxu0  ;;  %v3934_v2 = vld [vmem:[%s5198_s6 + $0x8] sm:$0xff] }
  0xfa   :  { %v190_v13 = vpop.f32.mrb[13].mxu0  ;;  %v502_v41 = vsel %vm455_vm1, %v3831_v7, 0 }
  0xfb   :  { %v2898_v14 = vpop.f32.mrb[14].mxu0  ;;  %v499_v32 = vsel %vm455_vm1, %v3835_v10, 0 }
  0xfc   :  { %2946 = vmatpush3.bf16.xpose.msra.mxu1 %v490_v11  ;;  %v3841_v15 = vpack.c.bf16 %v2898_v14, %v2897_v12  ;;  %v193_v16 = vpop.f32.mrb[15].mxu0  ;;  %v3953_v11 = vld [vmem:[%s5198_s6 + $0x38] sm:$0xff]  ;;  %v3961_v14 = vld [vmem:[%s5198_s6 + $0x20] sm:$0xff] }
  0xfd   :  { %3219 = vmatprep.subr.msk.bf16.mxu1 %vm455_vm1, %v3823_v61  ;;  %v3843_v17 = vpack.c.bf16 %v193_v16, %v190_v13  ;;  %5249 = vst [vmem:[#allocation10_spill] sm:$0xff] %v3961_v14 }
 0x101   :  { %v2925_v19 = vpop.f32.mrb[16].mxu0 }
 0x102   :  { %v384_v20 = vpop.f32.mrb[17].mxu0 }
 0x103   :  { %v2926_v21 = vpop.f32.mrb[18].mxu0 }
 0x104   :  { %2948 = vmatpush3.bf16.xpose.msra.mxu1 %v493_v18  ;;  %v3849_v22 = vpack.c.bf16 %v2926_v21, %v2925_v19  ;;  %v387_v23 = vpop.f32.mrb[19].mxu0  ;;  %v3966_v18 = vld [vmem:[%s5198_s6 + $0x28] sm:$0xff] }
 0x105   :  { %3220 = vmatprep.subr.msk.bf16.mxu1 %vm455_vm1, %v3819_v58  ;;  %v3851_v24 = vpack.c.bf16 %v387_v23, %v384_v20 }
 0x107   :  { %2971 = vmatprep.subr.bf16.mxu0 %v3851_v24 }
 0x108   :  { %2972 = vmatpush3.bf16.msra.mxu0 %v3851_v24 }
 0x109   :  { %v2929_v26 = vpop.f32.mrb[20].mxu0  ;;  %2973 = vmatprep.subr.bf16.mxu0 %v3849_v22 }
 0x10a   :  { %v400_v27 = vpop.f32.mrb[21].mxu0 }
 0x10b   :  { %v2930_v28 = vpop.f32.mrb[22].mxu0 }
 0x10c   :  { %2950 = vmatpush3.bf16.xpose.msra.mxu1 %v496_v25  ;;  %v3860_v29 = vpack.c.bf16 %v2930_v28, %v2929_v26  ;;  %v403_v30 = vpop.f32.mrb[23].mxu0  ;;  %2974 = vmatpush3.bf16.msra.mxu0 %v3849_v22  ;;  %v3982_v25 = vld [vmem:[%s5198_s6 + $0x50] sm:$0xff] }
 0x10d   :  { %3221 = vmatprep.subr.msk.bf16.mxu1 %vm455_vm1, %v3835_v10  ;;  %v3863_v31 = vpack.c.bf16 %v403_v30, %v400_v27  ;;  %5250 = vst [vmem:[#allocation11_spill] sm:$0xff] %v3982_v25  ;;  %v3988_v27 = vld [vmem:[%s5198_s6 + $0x58] sm:$0xff] }
 0x10e   :  { %5245 = vst [vmem:[#allocation6_spill] sm:$0xff] %v3860_v29  ;;  %5251 = vst [vmem:[#allocation12_spill] sm:$0xff] %v3988_v27 }
 0x10f   :  { %2975 = vmatprep.subr.bf16.mxu0 %v3863_v31 }
 0x110   :  { %2976 = vmatpush3.bf16.msra.mxu0 %v3863_v31 }
 0x111   :  { %v2933_v34 = vpop.f32.mrb[24].mxu0  ;;  %2977 = vmatprep.subr.bf16.mxu0 %v3860_v29 }
 0x112   :  { %v416_v36 = vpop.f32.mrb[25].mxu0 }
 0x113   :  { %v2934_v37 = vpop.f32.mrb[26].mxu0 }
 0x114   :  { %2952 = vmatpush3.bf16.xpose.msra.mxu1 %v499_v32  ;;  %v3872_v38 = vpack.c.bf16 %v2934_v37, %v2933_v34  ;;  %v419_v39 = vpop.f32.mrb[27].mxu0  ;;  %2978 = vmatpush3.bf16.msra.mxu0 %v3860_v29  ;;  %v3997_v32 = vld [vmem:[%s5198_s6 + $0x40] sm:$0xff] }
 0x115   :  { %3222 = vmatprep.subr.msk.bf16.mxu1 %vm455_vm1, %v3831_v7  ;;  %v3875_v40 = vpack.c.bf16 %v419_v39, %v416_v36  ;;  %5252 = vst [vmem:[#allocation13_spill] sm:$0xff] %v3997_v32  ;;  %v4002_v36 = vld [vmem:[%s5198_s6 + $0x48] sm:$0xff] }
 0x116   :  { %5246 = vst [vmem:[#allocation7_spill] sm:$0xff] %v3872_v38  ;;  %5253 = vst [vmem:[#allocation14_spill] sm:$0xff] %v4002_v36 }
 0x117   :  { %2979 = vmatprep.subr.bf16.mxu0 %v3875_v40 }
 0x118   :  { %2980 = vmatpush3.bf16.msra.mxu0 %v3875_v40 }
 0x119   :  { %v2937_v42 = vpop.f32.mrb[28].mxu0  ;;  %2981 = vmatprep.subr.bf16.mxu0 %v3872_v38 }
 0x11a   :  { %v432_v44 = vpop.f32.mrb[29].mxu0 }
 0x11b   :  { %v2938_v46 = vpop.f32.mrb[30].mxu0 }
 0x11c   :  { %2954 = vmatpush3.bf16.xpose.msra.mxu1 %v502_v41  ;;  %v3882_v49 = vpack.c.bf16 %v2938_v46, %v2937_v42  ;;  %v435_v50 = vpop.f32.mrb[31].mxu0  ;;  %2982 = vmatpush3.bf16.msra.mxu0 %v3872_v38 }
 0x11d   :  { %v3885_v51 = vpack.c.bf16 %v435_v50, %v432_v44  ;;  %v4018_v44 = vld [vmem:[%s5198_s6 + $0x70] sm:$0xff] }
 0x11e   :  { %5247 = vst [vmem:[#allocation8_spill] sm:$0xff] %v3882_v49  ;;  %5254 = vst [vmem:[#allocation15_spill] sm:$0xff] %v4018_v44 }
 0x11f   :  { %5248 = vst [vmem:[#allocation9_spill] sm:$0xff] %v3885_v51  ;;  %2983 = vmatprep.subr.bf16.mxu0 %v3885_v51 }
 0x120   :  { %2984 = vmatpush3.bf16.msra.mxu0 %v3885_v51 }
 0x121   :  { %2985 = vmatprep.subr.bf16.mxu0 %v3882_v49 }
 0x123   :  { %2956 = vmatmul.mubr.msk.bf16.vlgmr.msra.gmra.mrb[16].mxu1 %vm455_vm1, %v3803_v43 }
 0x124   :  { %2959 = vmatprep.mubr.msk.bf16.mxu1 %vm455_vm1, %v3821_v60  ;;  %2986 = vmatpush3.bf16.msra.mxu0 %v3882_v49 }
 0x12b   :  { %2960 = vmatmul.mubr.msk.bf16.gmra.mrb[20].mxu1 %vm455_vm1, %v3817_v56 }
 0x12c   :  { %2963 = vmatprep.mubr.msk.bf16.mxu1 %vm455_vm1, %v3833_v9 }
 0x133   :  { %2964 = vmatmul.mubr.msk.bf16.gmra.mrb[24].mxu1 %vm455_vm1, %v3829_v5 }
 0x134   :  { %2967 = vmatprep.mubr.msk.bf16.mxu1 %vm455_vm1, %v3843_v17 }
 0x13b   :  { %2968 = vmatmul.mubr.msk.bf16.gmra.mrb[28].mxu1 %vm455_vm1, %v3841_v15 }
 0x155   :  { %v3905_v52 = vpop.permute.xlu0 %882 }
 0x156   :  { %3223 = vmatprep.subr.msk.bf16.mxu0 %vm455_vm1, %v3905_v52 }
 0x1f6   :  { %v2957_v55 = vpop.f32.mrb[16].mxu1 }
 0x1f7   :  { %v3920_v57 = vadd.f32 %v2957_v55, %v3912_v53  ;;  %v538_v59 = vpop.f32.mrb[17].mxu1 }
 0x1f8   :  { %v3923_v62 = vadd.f32 %v538_v59, %v3917_v54  ;;  %v2958_v0 = vpop.f32.mrb[18].mxu1  ;;  %v4028_v59 = vld [vmem:[%s5198_s6 + $0x60] sm:$0xff] }
 0x1f9   :  { %605 = vmax.xlane.f32.xlu1 %v3920_v57  ;;  %v541_v1 = vpop.f32.mrb[19].mxu1  ;;  %v3938_v3 = vadd.f32 %v2958_v0, %v3928_v63  ;;  %5255 = vst [vmem:[#allocation16_spill] sm:$0xff] %v4028_v59 }
 0x1fa   :  { %601 = vmax.xlane.f32.xlu0 %v3923_v62  ;;  %v3941_v4 = vadd.f32 %v541_v1, %v3934_v2 }
 0x1fd   :  { %607 = vmax.xlane.f32.xlu1 %v3938_v3 }
 0x1fe   :  { %603 = vmax.xlane.f32.xlu0 %v3941_v4  ;;  %v2961_v8 = vpop.f32.mrb[20].mxu1 }
 0x1ff   :  { %v3956_v12 = vadd.f32 %v2961_v8, %v3946_v6  ;;  %v554_v13 = vpop.f32.mrb[21].mxu1 }
 0x200   :  { %v2962_v16 = vpop.f32.mrb[22].mxu1  ;;  %v3972_v21 = vadd.f32 %v554_v13, %v3961_v14  ;;  %v4042_v13 = vld [vmem:[%s5198_s6 + $0x78] sm:$0xff] }
 0x201   :  { %v3969_v19 = vadd.f32 %v2962_v16, %v3953_v11  ;;  %v557_v20 = vpop.f32.mrb[23].mxu1  ;;  %5256 = vst [vmem:[#allocation17_spill] sm:$0xff] %v4042_v13 }
 0x202   :  { %613 = vmax.xlane.f32.xlu0 %v3956_v12  ;;  %v3977_v23 = vadd.f32 %v557_v20, %v3966_v18  ;;  %v4050_v20 = vld [vmem:[%s5198_s6 + $0x68] sm:$0xff] }
 0x203   :  { %615 = vmax.xlane.f32.xlu1 %v3969_v19  ;;  %5257 = vst [vmem:[#allocation18_spill] sm:$0xff] %v4050_v20 }
 0x206   :  { %609 = vmax.xlane.f32.xlu0 %v3972_v21  ;;  %v2965_v26 = vpop.f32.mrb[24].mxu1 }
 0x207   :  { %v3991_v28 = vadd.f32 %v2965_v26, %v3982_v25  ;;  %611 = vmax.xlane.f32.xlu1 %v3977_v23  ;;  %v570_v30 = vpop.f32.mrb[25].mxu1 }
 0x208   :  { %v2966_v34 = vpop.f32.mrb[26].mxu1  ;;  %v4008_v41 = vadd.f32 %v570_v30, %v3997_v32  ;;  %v4057_v30 = vpop.permute.xlu1 %884 }
 0x209   :  { %v4005_v37 = vadd.f32 %v2966_v34, %v3988_v27  ;;  %v573_v39 = vpop.f32.mrb[27].mxu1 }
 0x20a   :  { %621 = vmax.xlane.f32.xlu0 %v3991_v28  ;;  %v4013_v42 = vadd.f32 %v573_v39, %v4002_v36 }
 0x20b   :  { %623 = vmax.xlane.f32.xlu1 %v4005_v37 }
 0x20e   :  { %617 = vmax.xlane.f32.xlu0 %v4008_v41  ;;  %v2969_v46 = vpop.f32.mrb[28].mxu1 }
 0x20f   :  { %619 = vmax.xlane.f32.xlu1 %v4013_v42  ;;  %v4023_v50 = vadd.f32 %v2969_v46, %v4018_v44  ;;  %v586_v55 = vpop.f32.mrb[29].mxu1 }
 0x210   :  { %v2970_v0 = vpop.f32.mrb[30].mxu1  ;;  %v4032_v8 = vadd.f32 %v586_v55, %v4028_v59 }
 0x211   :  { %v589_v1 = vpop.f32.mrb[31].mxu1  ;;  %v4045_v16 = vadd.f32 %v2970_v0, %v4042_v13 }
 0x212   :  { %629 = vmax.xlane.f32.xlu0 %v4023_v50  ;;  %v4054_v26 = vadd.f32 %v589_v1, %v4050_v20 }
 0x216   :  { %625 = vmax.xlane.f32.xlu0 %v4032_v8 }
 0x220   :  { %888 = vrot.lane.b32.xlu1 %v3805_v45, %s3653_s0 }
 0x22c   :  { %886 = vrot.lane.b32.xlu0 %v3809_v48, %s3653_s0 }
 0x244   :  { %631 = vmax.xlane.f32.xlu1 %v4045_v16 }
 0x248   :  { %627 = vmax.xlane.f32.xlu1 %v4054_v26 }
 0x286   :  { %v606_v34 = vpop.xlane.xlu1 %605 }
 0x287   :  { %v635_v39 = vsub.f32 %v3920_v57, %v606_v34  ;;  %v602_v46 = vpop.xlane.xlu0 %601 }
 0x288   :  { %v633_v55 = vsub.f32 %v3923_v62, %v602_v46 }
 0x289   :  { %v653_v0 = vmul.f32 1.442695, %v635_v39 }
 0x28a   :  { %v649_v13 = vmul.f32 1.442695, %v633_v55  ;;  %v608_v48 = vpop.xlane.xlu1 %607 }
 0x28b   :  { %3381 = vpow2.f32 %v653_v0  ;;  %v636_v45 = vsub.f32 %v3938_v3, %v608_v48  ;;  %v604_v59 = vpop.xlane.xlu0 %603 }
 0x28c   :  { %v634_v1 = vsub.f32 %v3941_v4, %v604_v59  ;;  %3383 = vpow2.f32 %v649_v13 }
 0x28d   :  { %v655_v20 = vmul.f32 1.442695, %v636_v45 }
 0x28e   :  { %v651_v44 = vmul.f32 1.442695, %v634_v1 }
 0x28f   :  { %3385 = vpow2.f32 %v655_v20  ;;  %v614_v45 = vpop.xlane.xlu0 %613 }
 0x290   :  { %3387 = vpow2.f32 %v651_v44  ;;  %v616_v44 = vpop.xlane.xlu1 %615  ;;  %v639_v20 = vsub.f32 %v3956_v12, %v614_v45 }
 0x291   :  { %v640_v1 = vsub.f32 %v3969_v19, %v616_v44 }
 0x292   :  { %v661_v46 = vmul.f32 1.442695, %v639_v20 }
 0x293   :  { %v610_v3 = vpop.xlane.xlu0 %609  ;;  %v663_v27 = vmul.f32 1.442695, %v640_v1 }
 0x294   :  { %v612_v13 = vpop.xlane.xlu1 %611  ;;  %v637_v34 = vsub.f32 %v3972_v21, %v610_v3  ;;  %3389 = vpow2.f32 %v661_v46 }
 0x295   :  { %v4063_v32 = vpop.eup %3381  ;;  %v638_v55 = vsub.f32 %v3977_v23, %v612_v13 }
 0x296   :  { %685 = vadd.xlane.f32.xlu0 %v4063_v32  ;;  %v4066_v57 = vpop.eup %3383  ;;  %v657_v36 = vmul.f32 1.442695, %v637_v34 }
 0x297   :  { %v622_v4 = vpop.xlane.xlu0 %621 }
 0x298   :  { %v624_v0 = vpop.xlane.xlu1 %623  ;;  %3391 = vpow2.f32 %v657_v36  ;;  %v643_v14 = vsub.f32 %v3991_v28, %v622_v4 }
 0x299   :  { %v4068_v62 = vpop.eup %3385  ;;  %v644_v28 = vsub.f32 %v4005_v37, %v624_v0 }
 0x29a   :  { %687 = vadd.xlane.f32.xlu1 %v4068_v62  ;;  %681 = vadd.xlane.f32.xlu0 %v4066_v57  ;;  %v4072_v48 = vpop.eup %3387  ;;  %v669_v23 = vmul.f32 1.442695, %v643_v14 }
 0x29b   :  { %v618_v59 = vpop.xlane.xlu0 %617 }
 0x29c   :  { %v620_v12 = vpop.xlane.xlu1 %619  ;;  %v641_v3 = vsub.f32 %v4008_v41, %v618_v59 }
 0x29d   :  { %v642_v41 = vsub.f32 %v4013_v42, %v620_v12 }
 0x29e   :  { %683 = vadd.xlane.f32.xlu1 %v4072_v48  ;;  %v4089_v13 = vpop.eup %3389  ;;  %v665_v36 = vmul.f32 1.442695, %v641_v3 }
 0x29f   :  { %v630_v39 = vpop.xlane.xlu0 %629 }
 0x2a0   :  { %v4087_v44 = vpop.permute.xlu1 %888 }
 0x2a3   :  { %v626_v25 = vpop.xlane.xlu0 %625 }
 0x2a4   :  { %v645_v45 = vsub.f32 %v4032_v8, %v626_v25 }
 0x2a6   :  { %v673_v19 = vmul.f32 1.442695, %v645_v45 }
 0x2a7   :  { %v887_v1 = vpop.permute.xlu0 %886 }
 0x2af   :  { %892 = vrot.lane.b32.xlu1 %v3819_v58, %s3653_s0  ;;  %v659_v58 = vmul.f32 1.442695, %v638_v55 }
 0x2b0   :  { %890 = vrot.lane.b32.xlu0 %v3823_v61, %s3653_s0  ;;  %v647_v61 = vsub.f32 %v4023_v50, %v630_v39 }
 0x2b1   :  { %3393 = vpow2.f32 %v659_v58  ;;  %v4093_v58 = vpop.eup %3391 }
 0x2b2   :  { %v677_v21 = vmul.f32 1.442695, %v647_v61  ;;  %3395 = vpow2.f32 %v663_v27  ;;  %v671_v27 = vmul.f32 1.442695, %v644_v28 }
 0x2b4   :  { %3397 = vpow2.f32 %v677_v21 }
 0x2b5   :  { %3399 = vpow2.f32 %v669_v23 }
 0x2b6   :  { %3401 = vpow2.f32 %v673_v19 }
 0x2b7   :  { %3403 = vpow2.f32 %v665_v36 }
 0x2bb   :  { %v4095_v25 = vpop.eup %3393 }
 0x2bc   :  { %v4101_v8 = vpop.eup %3395 }
 0x2be   :  { %v4103_v4 = vpop.eup %3397 }
 0x2bf   :  { %v4108_v20 = vpop.eup %3399 }
 0x2c0   :  { %v4110_v34 = vpop.eup %3401 }
 0x2c1   :  { %v4114_v39 = vpop.eup %3403 }
 0x2cf   :  { %693 = vadd.xlane.f32.xlu0 %v4089_v13 }
 0x2d1   :  { %v632_v61 = vpop.xlane.xlu1 %631 }
 0x2d2   :  { %v648_v14 = vsub.f32 %v4045_v16, %v632_v61  ;;  %v667_v16 = vmul.f32 1.442695, %v642_v41 }
 0x2d3   :  { %689 = vadd.xlane.f32.xlu1 %v4093_v58  ;;  %691 = vadd.xlane.f32.xlu0 %v4095_v25 }
 0x2d4   :  { %v679_v50 = vmul.f32 1.442695, %v648_v14 }
 0x2d5   :  { %v628_v37 = vpop.xlane.xlu1 %627 }
 0x2d6   :  { %3405 = vpow2.f32 %v679_v50  ;;  %v646_v59 = vsub.f32 %v4054_v26, %v628_v37 }
 0x2d7   :  { %695 = vadd.xlane.f32.xlu1 %v4101_v8  ;;  %709 = vadd.xlane.f32.xlu0 %v4103_v4  ;;  %3407 = vpow2.f32 %v671_v27 }
 0x2d8   :  { %3409 = vpow2.f32 %v667_v16  ;;  %v675_v42 = vmul.f32 1.442695, %v646_v59  ;;  %v923_v16 = vsel %vm455_vm1, %v3905_v52, 0 }
 0x2da   :  { %3411 = vpow2.f32 %v675_v42 }
 0x2db   :  { %701 = vadd.xlane.f32.xlu1 %v4108_v20  ;;  %705 = vadd.xlane.f32.xlu0 %v4110_v34 }
 0x2df   :  { %697 = vadd.xlane.f32.xlu1 %v4114_v39 }
 0x2e0   :  { %v4117_v46 = vpop.eup %3405 }
 0x2e1   :  { %711 = vadd.xlane.f32.xlu0 %v4117_v46  ;;  %v4120_v26 = vpop.eup %3407 }
 0x2e2   :  { %v4123_v55 = vpop.eup %3409 }
 0x2e3   :  { %703 = vadd.xlane.f32.xlu1 %v4120_v26 }
 0x2e4   :  { %v4126_v0 = vpop.eup %3411 }
 0x2e7   :  { %699 = vadd.xlane.f32.xlu1 %v4123_v55 }
 0x2eb   :  { %707 = vadd.xlane.f32.xlu1 %v4126_v0 }
 0x2f7   :  { %894 = vrot.lane.b32.xlu0 %v3835_v10, %s3653_s0 }
 0x2fb   :  { %858 = vrot.lane.b32.xlu0 %v3807_v47, %s3653_s0 }
 0x2fc   :  { %896 = vrot.lane.b32.xlu1 %v3831_v7, %s3653_s0 }
 0x2ff   :  { %862 = vrot.lane.b32.xlu0 %v3821_v60, %s3653_s0 }
 0x300   :  { %860 = vrot.lane.b32.xlu1 %v3803_v43, %s3653_s0 }
 0x303   :  { %866 = vrot.lane.b32.xlu0 %v3833_v9, %s3653_s0 }
 0x304   :  { %864 = vrot.lane.b32.xlu1 %v3817_v56, %s3653_s0 }
 0x307   :  { %870 = vrot.lane.b32.xlu0 %v3843_v17, %s3653_s0 }
 0x308   :  { %868 = vrot.lane.b32.xlu1 %v3829_v5, %s3653_s0 }
 0x30b   :  { %1203 = vrot.lane.b32.xlu0 %v3851_v24, %s3653_s0 }
 0x30c   :  { %872 = vrot.lane.b32.xlu1 %v3841_v15, %s3653_s0 }
 0x30f   :  { %1207 = vrot.lane.b32.xlu0 %v3863_v31, %s3653_s0 }
 0x310   :  { %1205 = vrot.lane.b32.xlu1 %v3849_v22, %s3653_s0 }
 0x313   :  { %1211 = vrot.lane.b32.xlu0 %v3875_v40, %s3653_s0 }
 0x314   :  { %1209 = vrot.lane.b32.xlu1 %v3860_v29, %s3653_s0 }
 0x317   :  { %1215 = vrot.lane.b32.xlu0 %v3885_v51, %s3653_s0 }
 0x318   :  { %1213 = vrot.lane.b32.xlu1 %v3872_v38, %s3653_s0 }
 0x31b   :  { %1340 = vrot.lane.b32.xlu0 %v3791_v35, %s3654_s24 }
 0x31c   :  { %1217 = vrot.lane.b32.xlu1 %v3882_v49, %s3653_s0  ;;  %s3655_s0 = smov 104  }
 0x320   :  { %1342 = vrot.lane.b32.xlu1 %v3789_v33, %s3654_s24 }
 0x323   :  { %v686_v12 = vpop.xlane.xlu0 %685 }
 0x327   :  { %v688_v21 = vpop.xlane.xlu1 %687  ;;  %v682_v45 = vpop.xlane.xlu0 %681 }
 0x328   :  { %3413 = vrcp.f32 %v688_v21 }
 0x329   :  { %3415 = vrcp.f32 %v682_v45 }
 0x32a   :  { %3417 = vrcp.f32 %v686_v12 }
 0x32b   :  { %v684_v23 = vpop.xlane.xlu1 %683  ;;  %v891_v52 = vpop.permute.xlu0 %890 }
 0x32c   :  { %3419 = vrcp.f32 %v684_v23  ;;  %v935_v59 = vsel %vm455_vm1, %v891_v52, 0 }
 0x332   :  { %v3414_v3 = vpop.eup %3413 }
 0x333   :  { %v3416_v19 = vpop.eup %3415  ;;  %v720_v61 = vmul.f32 %v3414_v3, %v4068_v62  ;;  %v926_v62 = vsel %vm455_vm1, %v4057_v30, 0 }
 0x334   :  { %v3418_v28 = vpop.eup %3417  ;;  %v714_v14 = vmul.f32 %v3416_v19, %v4066_v57  ;;  %v929_v57 = vsel %vm455_vm1, %v887_v1, 0 }
 0x335   :  { %v718_v41 = vmul.f32 %v3418_v28, %v4063_v32  ;;  %v932_v32 = vsel %vm455_vm1, %v4087_v44, 0 }
 0x336   :  { %v3420_v36 = vpop.eup %3419 }
 0x337   :  { %v716_v27 = vmul.f32 %v3420_v36, %v4072_v48  ;;  %v746_v37 = vpack.c.bf16 %v720_v61, %v718_v41  ;;  %v893_v48 = vpop.permute.xlu1 %892 }
 0x338   :  { %v938_v21 = vsel %vm455_vm1, %v893_v48, 0 }
 0x339   :  { %v745_v50 = vpack.c.bf16 %v716_v27, %v714_v14 }
 0x33b   :  { %2987 = vmatprep.mubr.bf16.mxu0 %v745_v50 }
 0x33c   :  { %2988 = vmatmul.mubr.bf16.vlgmr.msra.gmra.mrb[32].mxu0 %v746_v37 }
 0x33d   :  { %3004 = vmatpush3.bf16.xpose.msra.mxu0 %v923_v16 }
 0x33e   :  { %3224 = vmatprep.subr.msk.bf16.mxu0 %vm455_vm1, %v4057_v30 }
 0x345   :  { %3006 = vmatpush3.bf16.xpose.msra.mxu0 %v926_v62 }
 0x346   :  { %3225 = vmatprep.subr.msk.bf16.mxu0 %vm455_vm1, %v887_v1 }
 0x34d   :  { %3008 = vmatpush3.bf16.xpose.msra.mxu0 %v929_v57 }
 0x34e   :  { %3226 = vmatprep.subr.msk.bf16.mxu0 %vm455_vm1, %v4087_v44 }
 0x355   :  { %3010 = vmatpush3.bf16.xpose.msra.mxu0 %v932_v32 }
 0x356   :  { %3227 = vmatprep.subr.msk.bf16.mxu0 %vm455_vm1, %v891_v52 }
 0x35c   :  { %v694_v30 = vpop.xlane.xlu0 %693 }
 0x35d   :  { %3012 = vmatpush3.bf16.xpose.msra.mxu0 %v935_v59 }
 0x35e   :  { %3228 = vmatprep.subr.msk.bf16.mxu0 %vm455_vm1, %v893_v48 }
 0x360   :  { %v690_v42 = vpop.xlane.xlu1 %689  ;;  %v692_v1 = vpop.xlane.xlu0 %691 }
 0x361   :  { %3421 = vrcp.f32 %v690_v42 }
 0x362   :  { %3423 = vrcp.f32 %v692_v1 }
 0x363   :  { %3425 = vrcp.f32 %v694_v30 }
 0x364   :  { %v696_v12 = vpop.xlane.xlu1 %695  ;;  %v710_v44 = vpop.xlane.xlu0 %709 }
 0x365   :  { %3427 = vrcp.f32 %v696_v12  ;;  %3014 = vmatpush3.bf16.xpose.msra.mxu0 %v938_v21 }
 0x368   :  { %v702_v45 = vpop.xlane.xlu1 %701  ;;  %v706_v23 = vpop.xlane.xlu0 %705 }
 0x36b   :  { %v3422_v3 = vpop.eup %3421 }
 0x36c   :  { %v3424_v19 = vpop.eup %3423  ;;  %v698_v28 = vpop.xlane.xlu1 %697  ;;  %v722_v36 = vmul.f32 %v3422_v3, %v4093_v58 }
 0x36d   :  { %v3426_v61 = vpop.eup %3425  ;;  %v724_v14 = vmul.f32 %v3424_v19, %v4095_v25 }
 0x36e   :  { %v712_v27 = vpop.xlane.xlu0 %711  ;;  %v726_v16 = vmul.f32 %v3426_v61, %v4089_v13 }
 0x36f   :  { %v3428_v41 = vpop.eup %3427  ;;  %v747_v50 = vpack.c.bf16 %v724_v14, %v722_v36 }
 0x370   :  { %v704_v37 = vpop.xlane.xlu1 %703  ;;  %v728_v62 = vmul.f32 %v3428_v41, %v4101_v8 }
 0x371   :  { %2991 = vmatprep.mubr.bf16.mxu0 %v747_v50  ;;  %3429 = vrcp.f32 %v704_v37 }
 0x372   :  { %v895_v57 = vpop.permute.xlu0 %894  ;;  %v748_v32 = vpack.c.bf16 %v728_v62, %v726_v16  ;;  %3431 = vrcp.f32 %v698_v28 }
 0x373   :  { %3229 = vmatprep.subr.msk.bf16.mxu0 %vm455_vm1, %v895_v57  ;;  %v941_v58 = vsel %vm455_vm1, %v895_v57, 0  ;;  %3433 = vrcp.f32 %v702_v45 }
 0x374   :  { %v700_v52 = vpop.xlane.xlu1 %699  ;;  %2992 = vmatmul.mubr.bf16.gmra.mrb[36].mxu0 %v748_v32 }
 0x375   :  { %3435 = vrcp.f32 %v700_v52  ;;  %3016 = vmatpush3.bf16.xpose.msra.mxu0 %v941_v58 }
 0x376   :  { %v859_v25 = vpop.permute.xlu0 %858  ;;  %3437 = vrcp.f32 %v706_v23 }
 0x378   :  { %v708_v48 = vpop.xlane.xlu1 %707 }
 0x379   :  { %3439 = vrcp.f32 %v708_v48 }
 0x37a   :  { %3441 = vrcp.f32 %v712_v27  ;;  %v863_v13 = vpop.permute.xlu0 %862 }
 0x37b   :  { %v3430_v8 = vpop.eup %3429  ;;  %3443 = vrcp.f32 %v710_v44 }
 0x37c   :  { %v897_v59 = vpop.permute.xlu1 %896  ;;  %v3432_v30 = vpop.eup %3431  ;;  %v736_v45 = vmul.f32 %v3430_v8, %v4120_v26 }
 0x37d   :  { %3230 = vmatprep.subr.msk.bf16.mxu0 %vm455_vm1, %v897_v59  ;;  %v944_v42 = vsel %vm455_vm1, %v897_v59, 0  ;;  %v3434_v1 = vpop.eup %3433  ;;  %v730_v23 = vmul.f32 %v3432_v30, %v4114_v39 }
 0x37e   :  { %3018 = vmatpush3.bf16.xpose.msra.mxu0 %v944_v42  ;;  %v867_v12 = vpop.permute.xlu0 %866  ;;  %v734_v44 = vmul.f32 %v3434_v1, %v4108_v20 }
 0x37f   :  { %v3436_v21 = vpop.eup %3435 }
 0x380   :  { %v861_v3 = vpop.permute.xlu1 %860  ;;  %v732_v19 = vmul.f32 %v3436_v21, %v4123_v55  ;;  %v3438_v28 = vpop.eup %3437  ;;  %v750_v27 = vpack.c.bf16 %v736_v45, %v734_v44 }
 0x381   :  { %v738_v37 = vmul.f32 %v3438_v28, %v4110_v34 }
 0x382   :  { %v871_v36 = vpop.permute.xlu0 %870  ;;  %v749_v61 = vpack.c.bf16 %v732_v19, %v730_v23 }
 0x383   :  { %v3440_v14 = vpop.eup %3439 }
 0x384   :  { %v3442_v41 = vpop.eup %3441  ;;  %v865_v50 = vpop.permute.xlu1 %864  ;;  %2995 = vmatprep.mubr.bf16.mxu0 %v749_v61  ;;  %v740_v16 = vmul.f32 %v3440_v14, %v4126_v0 }
 0x385   :  { %2996 = vmatmul.mubr.bf16.gmra.mrb[40].mxu0 %v750_v27  ;;  %v3444_v26 = vpop.eup %3443  ;;  %v744_v55 = vmul.f32 %v3442_v41, %v4117_v46 }
 0x386   :  { %v1204_v62 = vpop.permute.xlu0 %1203  ;;  %v751_v39 = vpack.c.bf16 %v740_v16, %v738_v37  ;;  %v742_v20 = vmul.f32 %v3444_v26, %v4103_v4 }
 0x387   :  { %3035 = vmatprep.subr.bf16.mxu1 %v1204_v62 }
 0x388   :  { %v869_v57 = vpop.permute.xlu1 %868  ;;  %2999 = vmatprep.mubr.bf16.mxu0 %v751_v39  ;;  %3036 = vmatpush3.bf16.msra.mxu1 %v1204_v62  ;;  %v752_v32 = vpack.c.bf16 %v744_v55, %v742_v20 }
 0x38a   :  { %v1208_v0 = vpop.permute.xlu0 %1207 }
 0x38c   :  { %v873_v58 = vpop.permute.xlu1 %872 }
 0x38d   :  { %3000 = vmatmul.mubr.bf16.gmra.mrb[44].mxu0 %v752_v32 }
 0x38e   :  { %3019 = vmatprep.mubr.msk.bf16.mxu0 %vm455_vm1, %v859_v25  ;;  %v1212_v46 = vpop.permute.xlu0 %1211 }
 0x390   :  { %v1206_v34 = vpop.permute.xlu1 %1205 }
 0x391   :  { %3037 = vmatprep.subr.bf16.mxu1 %v1206_v34 }
 0x392   :  { %3038 = vmatpush3.bf16.msra.mxu1 %v1206_v34  ;;  %v1216_v25 = vpop.permute.xlu0 %1215  ;;  %v5274_v34 = vld [vmem:[#allocation10_spill] sm:$0xff] }
 0x393   :  { %3039 = vmatprep.subr.bf16.mxu1 %v1208_v0 }
 0x394   :  { %v1210_v52 = vpop.permute.xlu1 %1209 }
 0x395   :  { %3020 = vmatmul.mubr.msk.bf16.vlgmr.msra.gmra.mrb[48].mxu0 %vm455_vm1, %v861_v3 }
 0x396   :  { %3023 = vmatprep.mubr.msk.bf16.mxu0 %vm455_vm1, %v863_v13  ;;  %3040 = vmatpush3.bf16.msra.mxu1 %v1208_v0  ;;  %v4212_v13 = vpop.permute.xlu0 %1340 }
 0x397   :  { %3041 = vmatprep.subr.bf16.mxu1 %v1210_v52 }
 0x398   :  { %v1214_v4 = vpop.permute.xlu1 %1213 }
 0x39a   :  { %3042 = vmatpush3.bf16.msra.mxu1 %v1210_v52  ;;  %v5275_v52 = vld [vmem:[#allocation12_spill] sm:$0xff] }
 0x39b   :  { %3043 = vmatprep.subr.bf16.mxu1 %v1212_v46 }
 0x39c   :  { %v1218_v48 = vpop.permute.xlu1 %1217 }
 0x39d   :  { %3024 = vmatmul.mubr.msk.bf16.gmra.mrb[52].mxu0 %vm455_vm1, %v865_v50 }
 0x39e   :  { %3027 = vmatprep.mubr.msk.bf16.mxu0 %vm455_vm1, %v867_v12  ;;  %3044 = vmatpush3.bf16.msra.mxu1 %v1212_v46 }
 0x39f   :  { %3045 = vmatprep.subr.bf16.mxu1 %v1214_v4 }
 0x3a2   :  { %3046 = vmatpush3.bf16.msra.mxu1 %v1214_v4  ;;  %v5276_v4 = vld [vmem:[#allocation11_spill] sm:$0xff] }
 0x3a3   :  { %3047 = vmatprep.subr.bf16.mxu1 %v1216_v25 }
 0x3a5   :  { %3028 = vmatmul.mubr.msk.bf16.gmra.mrb[56].mxu0 %vm455_vm1, %v869_v57 }
 0x3a6   :  { %3031 = vmatprep.mubr.msk.bf16.mxu0 %vm455_vm1, %v871_v36  ;;  %3048 = vmatpush3.bf16.msra.mxu1 %v1216_v25 }
 0x3a7   :  { %3049 = vmatprep.subr.bf16.mxu1 %v1218_v48 }
 0x3aa   :  { %3050 = vmatpush3.bf16.msra.mxu1 %v1218_v48 }
 0x3ab   :  { %3231 = vmatprep.subr.msk.bf16.mxu1 %vm455_vm1, %v4212_v13 }
 0x3ad   :  { %3032 = vmatmul.mubr.msk.bf16.gmra.mrb[60].mxu0 %vm455_vm1, %v873_v58 }
 0x40f   :  { %v4217_v8 = vpop.f32.mrb[32].mxu0 }
 0x410   :  { %5258 = vst [vmem:[#allocation19_spill] sm:$0xff] %v4217_v8  ;;  %v4219_v59 = vpop.f32.mrb[33].mxu0 }
 0x411   :  { %5259 = vst [vmem:[#allocation20_spill] sm:$0xff] %v4219_v59  ;;  %v4221_v30 = vpop.f32.mrb[34].mxu0 }
 0x412   :  { %5260 = vst [vmem:[#allocation21_spill] sm:$0xff] %v4221_v30  ;;  %v4223_v42 = vpop.f32.mrb[35].mxu0  ;;  %v4601_v30 = vld [vmem:[%s5198_s6 + $0x48] sm:$0xff] }
 0x413   :  { %5261 = vst [vmem:[#allocation22_spill] sm:$0xff] %v4223_v42 }
 0x447   :  { %v4225_v1 = vpop.f32.mrb[36].mxu0 }
 0x448   :  { %5262 = vst [vmem:[#allocation23_spill] sm:$0xff] %v4225_v1  ;;  %v4227_v12 = vpop.f32.mrb[37].mxu0 }
 0x449   :  { %5263 = vst [vmem:[#allocation24_spill] sm:$0xff] %v4227_v12  ;;  %v4229_v21 = vpop.f32.mrb[38].mxu0 }
 0x44a   :  { %5264 = vst [vmem:[#allocation25_spill] sm:$0xff] %v4229_v21  ;;  %v4231_v45 = vpop.f32.mrb[39].mxu0 }
 0x44b   :  { %5265 = vst [vmem:[#allocation26_spill] sm:$0xff] %v4231_v45 }
 0x458   :  { %v4233_v3 = vpop.f32.mrb[40].mxu0 }
 0x459   :  { %5266 = vst [vmem:[#allocation27_spill] sm:$0xff] %v4233_v3  ;;  %v4235_v23 = vpop.f32.mrb[41].mxu0 }
 0x45a   :  { %5267 = vst [vmem:[#allocation28_spill] sm:$0xff] %v4235_v23  ;;  %v4237_v19 = vpop.f32.mrb[42].mxu0 }
 0x45b   :  { %5268 = vst [vmem:[#allocation29_spill] sm:$0xff] %v4237_v19  ;;  %v4239_v28 = vpop.f32.mrb[43].mxu0 }
 0x45c   :  { %5269 = vst [vmem:[#allocation30_spill] sm:$0xff] %v4239_v28 }
 0x460   :  { %v4241_v44 = vpop.f32.mrb[44].mxu0 }
 0x461   :  { %5270 = vst [vmem:[#allocation31_spill] sm:$0xff] %v4241_v44  ;;  %v4243_v36 = vpop.f32.mrb[45].mxu0 }
 0x462   :  { %5271 = vst [vmem:[#allocation32_spill] sm:$0xff] %v4243_v36  ;;  %v4245_v61 = vpop.f32.mrb[46].mxu0 }
 0x463   :  { %5272 = vst [vmem:[#allocation33_spill] sm:$0xff] %v4245_v61  ;;  %v4247_v14 = vpop.f32.mrb[47].mxu0 }
 0x464   :  { %5273 = vst [vmem:[#allocation34_spill] sm:$0xff] %v4247_v14 }
 0x468   :  { %v3021_v27 = vpop.f32.mrb[48].mxu0 }
 0x469   :  { %v989_v41 = vadd.f32 %v3021_v27, %v3912_v53  ;;  %v980_v50 = vpop.f32.mrb[49].mxu0 }
 0x46a   :  { %v3022_v37 = vpop.f32.mrb[50].mxu0  ;;  %v981_v62 = vadd.f32 %v980_v50, %v3917_v54  ;;  %v5278_v50 = vld [vmem:[#allocation13_spill] sm:$0xff] }
 0x46b   :  { %1047 = vmax.xlane.f32.xlu0 %v989_v41  ;;  %v983_v16 = vpop.f32.mrb[51].mxu0  ;;  %v992_v55 = vadd.f32 %v3022_v37, %v3928_v63 }
 0x46c   :  { %v984_v26 = vadd.f32 %v983_v16, %v3934_v2 }
 0x46e   :  { %1045 = vmax.xlane.f32.xlu1 %v984_v26 }
 0x46f   :  { %1043 = vmax.xlane.f32.xlu0 %v981_v62 }
 0x470   :  { %v3025_v39 = vpop.f32.mrb[52].mxu0 }
 0x471   :  { %v996_v57 = vpop.f32.mrb[53].mxu0  ;;  %v4257_v58 = vadd.f32 %v3025_v39, %v3946_v6 }
 0x472   :  { %v3026_v20 = vpop.f32.mrb[54].mxu0  ;;  %v4265_v63 = vadd.f32 %v996_v57, %v5274_v34 }
 0x473   :  { %v4254_v32 = vadd.f32 %v3026_v20, %v3953_v11  ;;  %1049 = vmax.xlane.f32.xlu0 %v992_v55  ;;  %v999_v53 = vpop.f32.mrb[55].mxu0  ;;  %v5279_v20 = vld [vmem:[#allocation15_spill] sm:$0xff] }
 0x474   :  { %v4261_v2 = vadd.f32 %v999_v53, %v3966_v18  ;;  %v5277_v18 = vld [vmem:[#allocation14_spill] sm:$0xff] }
 0x475   :  { %1057 = vmax.xlane.f32.xlu1 %v4254_v32 }
 0x477   :  { %1055 = vmax.xlane.f32.xlu0 %v4257_v58 }
 0x478   :  { %v3029_v54 = vpop.f32.mrb[56].mxu0 }
 0x479   :  { %1053 = vmax.xlane.f32.xlu1 %v4261_v2  ;;  %v1012_v11 = vpop.f32.mrb[57].mxu0  ;;  %v4273_v25 = vadd.f32 %v3029_v54, %v5276_v4  ;;  %v5280_v54 = vld [vmem:[#allocation16_spill] sm:$0xff]  ;;  %v5284_v4 = vld [vmem:[#allocation18_spill] sm:$0xff] }
 0x47a   :  { %v3030_v0 = vpop.f32.mrb[58].mxu0  ;;  %v4281_v37 = vadd.f32 %v1012_v11, %v5278_v50  ;;  %v5281_v11 = vld [vmem:[#allocation2_spill] sm:$0xff] }
 0x47b   :  { %v4269_v46 = vadd.f32 %v3030_v0, %v5275_v52  ;;  %1051 = vmax.xlane.f32.xlu0 %v4265_v63  ;;  %v1015_v6 = vpop.f32.mrb[59].mxu0  ;;  %v5282_v0 = vld [vmem:[#allocation3_spill] sm:$0xff]  ;;  %v5283_v52 = vld [vmem:[#allocation17_spill] sm:$0xff] }
 0x47c   :  { %v4277_v48 = vadd.f32 %v1015_v6, %v5277_v18 }
 0x47d   :  { %1065 = vmax.xlane.f32.xlu1 %v4269_v46 }
 0x47f   :  { %1063 = vmax.xlane.f32.xlu0 %v4273_v25 }
 0x480   :  { %v3033_v27 = vpop.f32.mrb[60].mxu0 }
 0x481   :  { %1061 = vmax.xlane.f32.xlu1 %v4277_v48  ;;  %v1028_v16 = vpop.f32.mrb[61].mxu0  ;;  %v4286_v53 = vadd.f32 %v3033_v27, %v5279_v20  ;;  %v4305_v27 = vpop.permute.xlu1 %1342 }
 0x482   :  { %v3034_v39 = vpop.f32.mrb[62].mxu0  ;;  %v4290_v34 = vadd.f32 %v1028_v16, %v5280_v54 }
 0x483   :  { %1059 = vmax.xlane.f32.xlu0 %v4281_v37  ;;  %v1031_v57 = vpop.f32.mrb[63].mxu0  ;;  %v4298_v6 = vadd.f32 %v3034_v39, %v5283_v52 }
 0x484   :  { %v4302_v18 = vadd.f32 %v1031_v57, %v5284_v4 }
 0x487   :  { %1071 = vmax.xlane.f32.xlu0 %v4286_v53 }
 0x48b   :  { %1067 = vmax.xlane.f32.xlu0 %v4290_v34 }
 0x492   :  { %1346 = vrot.lane.b32.xlu1 %v5281_v11, %s3654_s24 }
 0x4a1   :  { %1344 = vrot.lane.b32.xlu0 %v5282_v0, %s3654_s24 }
 0x4b6   :  { %1073 = vmax.xlane.f32.xlu1 %v4298_v6 }
 0x4ba   :  { %1069 = vmax.xlane.f32.xlu1 %v4302_v18 }
 0x4f8   :  { %v1048_v50 = vpop.xlane.xlu0 %1047 }
 0x4f9   :  { %v1077_v16 = vsub.f32 %v989_v41, %v1048_v50 }
 0x4fb   :  { %v1095_v20 = vmul.f32 1.442695, %v1077_v16  ;;  %v1046_v54 = vpop.xlane.xlu1 %1045 }
 0x4fc   :  { %v1076_v36 = vsub.f32 %v984_v26, %v1046_v54  ;;  %v1044_v14 = vpop.xlane.xlu0 %1043 }
 0x4fd   :  { %3445 = vpow2.f32 %v1095_v20  ;;  %v1075_v44 = vsub.f32 %v981_v62, %v1044_v14 }
 0x4fe   :  { %v1093_v61 = vmul.f32 1.442695, %v1076_v36 }
 0x4ff   :  { %v1091_v39 = vmul.f32 1.442695, %v1075_v44 }
 0x500   :  { %3447 = vpow2.f32 %v1093_v61  ;;  %v1050_v52 = vpop.xlane.xlu0 %1049  ;;  %v5286_v61 = vld [vmem:[#allocation4_spill] sm:$0xff] }
 0x501   :  { %3449 = vpow2.f32 %v1091_v39  ;;  %v1078_v23 = vsub.f32 %v992_v55, %v1050_v52 }
 0x502   :  { %v1058_v26 = vpop.xlane.xlu1 %1057 }
 0x503   :  { %v1097_v57 = vmul.f32 1.442695, %v1078_v23  ;;  %v5285_v23 = vld [vmem:[#allocation5_spill] sm:$0xff]  ;;  %v1082_v3 = vsub.f32 %v4254_v32, %v1058_v26 }
 0x504   :  { %v1056_v44 = vpop.xlane.xlu0 %1055 }
 0x505   :  { %3451 = vpow2.f32 %v1097_v57  ;;  %v1081_v55 = vsub.f32 %v4257_v58, %v1056_v44  ;;  %v1105_v21 = vmul.f32 1.442695, %v1082_v3 }
 0x506   :  { %v1054_v50 = vpop.xlane.xlu1 %1053 }
 0x507   :  { %v4307_v4 = vpop.eup %3445  ;;  %v1103_v20 = vmul.f32 1.442695, %v1081_v55  ;;  %v1080_v39 = vsub.f32 %v4261_v2, %v1054_v50 }
 0x508   :  { %1127 = vadd.xlane.f32.xlu1 %v4307_v4  ;;  %v1052_v14 = vpop.xlane.xlu0 %1051 }
 0x509   :  { %v1079_v54 = vsub.f32 %v4265_v63, %v1052_v14  ;;  %3453 = vpow2.f32 %v1103_v20  ;;  %v1101_v12 = vmul.f32 1.442695, %v1080_v39 }
 0x50a   :  { %v4310_v28 = vpop.eup %3447  ;;  %v1066_v52 = vpop.xlane.xlu1 %1065 }
 0x50b   :  { %v4312_v41 = vpop.eup %3449  ;;  %1125 = vadd.xlane.f32.xlu0 %v4310_v28  ;;  %v1099_v19 = vmul.f32 1.442695, %v1079_v54  ;;  %v1086_v32 = vsub.f32 %v4269_v46, %v1066_v52 }
 0x50c   :  { %1123 = vadd.xlane.f32.xlu1 %v4312_v41  ;;  %v1064_v62 = vpop.xlane.xlu0 %1063 }
 0x50d   :  { %v1085_v45 = vsub.f32 %v4273_v25, %v1064_v62  ;;  %3455 = vpow2.f32 %v1099_v19 }
 0x50e   :  { %v1062_v1 = vpop.xlane.xlu1 %1061  ;;  %3457 = vpow2.f32 %v1101_v12 }
 0x50f   :  { %v4316_v36 = vpop.eup %3451  ;;  %v1111_v44 = vmul.f32 1.442695, %v1085_v45  ;;  %3459 = vpow2.f32 %v1105_v21  ;;  %v1113_v45 = vmul.f32 1.442695, %v1086_v32  ;;  %v1084_v19 = vsub.f32 %v4277_v48, %v1062_v1 }
 0x510   :  { %1129 = vadd.xlane.f32.xlu1 %v4316_v36  ;;  %v1060_v16 = vpop.xlane.xlu0 %1059 }
 0x511   :  { %v1083_v63 = vsub.f32 %v4281_v37, %v1060_v16  ;;  %3461 = vpow2.f32 %v1111_v44 }
 0x512   :  { %v4334_v3 = vpop.permute.xlu1 %1346 }
 0x513   :  { %v1107_v26 = vmul.f32 1.442695, %v1083_v63  ;;  %v4332_v50 = vpop.eup %3453 }
 0x514   :  { %v1072_v57 = vpop.xlane.xlu0 %1071 }
 0x515   :  { %v1089_v58 = vsub.f32 %v4286_v53, %v1072_v57  ;;  %v1109_v53 = vmul.f32 1.442695, %v1084_v19 }
 0x517   :  { %v1119_v2 = vmul.f32 1.442695, %v1089_v58  ;;  %v4338_v21 = vpop.eup %3455 }
 0x518   :  { %v1068_v14 = vpop.xlane.xlu0 %1067  ;;  %v4340_v37 = vpop.eup %3457 }
 0x519   :  { %v1087_v55 = vsub.f32 %v4290_v34, %v1068_v14  ;;  %3463 = vpow2.f32 %v1119_v2  ;;  %v4345_v62 = vpop.eup %3459 }
 0x51a   :  { %3465 = vpow2.f32 %v1107_v26 }
 0x51b   :  { %v1115_v12 = vmul.f32 1.442695, %v1087_v55  ;;  %v4347_v1 = vpop.eup %3461 }
 0x51c   :  { %v1345_v44 = vpop.permute.xlu0 %1344 }
 0x51d   :  { %3467 = vpow2.f32 %v1115_v12 }
 0x51e   :  { %3469 = vpow2.f32 %v1113_v45 }
 0x521   :  { %1348 = vrot.lane.b32.xlu0 %v5285_v23, %s3654_s24  ;;  %1350 = vrot.lane.b32.xlu1 %v5286_v61, %s3654_s24 }
 0x523   :  { %v4352_v20 = vpop.eup %3463 }
 0x524   :  { %v4354_v54 = vpop.eup %3465 }
 0x527   :  { %v4358_v39 = vpop.eup %3467 }
 0x528   :  { %v4360_v52 = vpop.eup %3469 }
 0x540   :  { %1135 = vadd.xlane.f32.xlu0 %v4332_v50 }
 0x543   :  { %v1074_v25 = vpop.xlane.xlu1 %1073 }
 0x544   :  { %v1090_v46 = vsub.f32 %v4298_v6, %v1074_v25  ;;  %1131 = vadd.xlane.f32.xlu0 %v4338_v21 }
 0x545   :  { %1133 = vadd.xlane.f32.xlu1 %v4340_v37 }
 0x546   :  { %v1121_v34 = vmul.f32 1.442695, %v1090_v46 }
 0x547   :  { %v1070_v16 = vpop.xlane.xlu1 %1069 }
 0x548   :  { %3471 = vpow2.f32 %v1121_v34  ;;  %v1088_v48 = vsub.f32 %v4302_v18, %v1070_v16  ;;  %1137 = vadd.xlane.f32.xlu0 %v4345_v62  ;;  %v1381_v34 = vsel %vm455_vm1, %v4212_v13, 0 }
 0x549   :  { %1143 = vadd.xlane.f32.xlu1 %v4347_v1  ;;  %3473 = vpow2.f32 %v1109_v53 }
 0x54a   :  { %v1117_v6 = vmul.f32 1.442695, %v1088_v48 }
 0x54c   :  { %1151 = vadd.xlane.f32.xlu0 %v4352_v20  ;;  %3475 = vpow2.f32 %v1117_v6 }
 0x54d   :  { %1139 = vadd.xlane.f32.xlu1 %v4354_v54 }
 0x550   :  { %1147 = vadd.xlane.f32.xlu0 %v4358_v39 }
 0x551   :  { %1145 = vadd.xlane.f32.xlu1 %v4360_v52 }
 0x552   :  { %v4364_v18 = vpop.eup %3471 }
 0x553   :  { %v4366_v57 = vpop.eup %3473 }
 0x554   :  { %1153 = vadd.xlane.f32.xlu0 %v4364_v18 }
 0x555   :  { %1141 = vadd.xlane.f32.xlu1 %v4366_v57 }
 0x556   :  { %v4370_v58 = vpop.eup %3475 }
 0x559   :  { %1149 = vadd.xlane.f32.xlu1 %v4370_v58 }
 0x56a   :  { %1354 = vrot.lane.b32.xlu1 %v3831_v7, %s3654_s24  ;;  %1352 = vrot.lane.b32.xlu0 %v3835_v10, %s3654_s24 }
 0x56e   :  { %1326 = vrot.lane.b32.xlu1 %v3803_v43, %s3654_s24  ;;  %1324 = vrot.lane.b32.xlu0 %v3807_v47, %s3654_s24 }
 0x572   :  { %1330 = vrot.lane.b32.xlu1 %v3817_v56, %s3654_s24  ;;  %1328 = vrot.lane.b32.xlu0 %v3821_v60, %s3654_s24 }
 0x576   :  { %1334 = vrot.lane.b32.xlu1 %v3829_v5, %s3654_s24  ;;  %1332 = vrot.lane.b32.xlu0 %v3833_v9, %s3654_s24 }
 0x57a   :  { %1338 = vrot.lane.b32.xlu1 %v3841_v15, %s3654_s24  ;;  %1336 = vrot.lane.b32.xlu0 %v3843_v17, %s3654_s24 }
 0x57e   :  { %1655 = vrot.lane.b32.xlu1 %v3849_v22, %s3654_s24  ;;  %1653 = vrot.lane.b32.xlu0 %v3851_v24, %s3654_s24 }
 0x582   :  { %1659 = vrot.lane.b32.xlu1 %v3860_v29, %s3654_s24  ;;  %1657 = vrot.lane.b32.xlu0 %v3863_v31, %s3654_s24 }
 0x586   :  { %1663 = vrot.lane.b32.xlu1 %v3872_v38, %s3654_s24  ;;  %1661 = vrot.lane.b32.xlu0 %v3875_v40, %s3654_s24 }
 0x58a   :  { %1667 = vrot.lane.b32.xlu1 %v3882_v49, %s3654_s24  ;;  %1665 = vrot.lane.b32.xlu0 %v3885_v51, %s3654_s24 }
 0x58e   :  { %1792 = vrot.lane.b32.xlu1 %v3789_v33, %s3655_s0  ;;  %1790 = vrot.lane.b32.xlu0 %v3791_v35, %s3655_s0 }
 0x595   :  { %v1128_v63 = vpop.xlane.xlu1 %1127 }
 0x598   :  { %v1126_v14 = vpop.xlane.xlu0 %1125 }
 0x599   :  { %3477 = vrcp.f32 %v1126_v14  ;;  %v1124_v2 = vpop.xlane.xlu1 %1123 }
 0x59a   :  { %3479 = vrcp.f32 %v1124_v2 }
 0x59b   :  { %3481 = vrcp.f32 %v1128_v63 }
 0x59c   :  { %v1349_v13 = vpop.permute.xlu0 %1348 }
 0x59d   :  { %v1130_v55 = vpop.xlane.xlu1 %1129 }
 0x59e   :  { %3483 = vrcp.f32 %v1130_v55 }
 0x5a3   :  { %v3478_v32 = vpop.eup %3477 }
 0x5a4   :  { %v3480_v26 = vpop.eup %3479  ;;  %v1158_v12 = vmul.f32 %v3478_v32, %v4310_v28  ;;  %v1384_v28 = vsel %vm455_vm1, %v4305_v27, 0 }
 0x5a5   :  { %v1156_v45 = vmul.f32 %v3480_v26, %v4312_v41  ;;  %v3482_v19 = vpop.eup %3481  ;;  %v1390_v41 = vsel %vm455_vm1, %v4334_v3, 0 }
 0x5a6   :  { %v1160_v35 = vmul.f32 %v3482_v19, %v4307_v4  ;;  %v1387_v4 = vsel %vm455_vm1, %v1345_v44, 0 }
 0x5a7   :  { %v1187_v33 = vpack.c.bf16 %v1158_v12, %v1156_v45 }
 0x5a8   :  { %v3484_v25 = vpop.eup %3483 }
 0x5a9   :  { %v1162_v46 = vmul.f32 %v3484_v25, %v4316_v36  ;;  %3051 = vmatprep.mubr.bf16.mxu1 %v1187_v33  ;;  %v1393_v36 = vsel %vm455_vm1, %v1349_v13, 0 }
 0x5ab   :  { %v1188_v53 = vpack.c.bf16 %v1162_v46, %v1160_v35 }
 0x5ad   :  { %3052 = vmatmul.mubr.bf16.vlgmr.msra.gmra.mrb[32].mxu1 %v1188_v53 }
 0x5ae   :  { %3068 = vmatpush3.bf16.xpose.msra.mxu1 %v1381_v34 }
 0x5af   :  { %3232 = vmatprep.subr.msk.bf16.mxu1 %vm455_vm1, %v4305_v27  ;;  %v1351_v27 = vpop.permute.xlu1 %1350 }
 0x5b6   :  { %3070 = vmatpush3.bf16.xpose.msra.mxu1 %v1384_v28 }
 0x5b7   :  { %3233 = vmatprep.subr.msk.bf16.mxu1 %vm455_vm1, %v1345_v44  ;;  %v1396_v44 = vsel %vm455_vm1, %v1351_v27, 0 }
 0x5be   :  { %3072 = vmatpush3.bf16.xpose.msra.mxu1 %v1387_v4 }
 0x5bf   :  { %3234 = vmatprep.subr.msk.bf16.mxu1 %vm455_vm1, %v4334_v3 }
 0x5c6   :  { %3074 = vmatpush3.bf16.xpose.msra.mxu1 %v1390_v41 }
 0x5c7   :  { %3235 = vmatprep.subr.msk.bf16.mxu1 %vm455_vm1, %v1349_v13 }
 0x5cd   :  { %v1136_v16 = vpop.xlane.xlu0 %1135 }
 0x5ce   :  { %3076 = vmatpush3.bf16.xpose.msra.mxu1 %v1393_v36 }
 0x5cf   :  { %3236 = vmatprep.subr.msk.bf16.mxu1 %vm455_vm1, %v1351_v27 }
 0x5d1   :  { %v1132_v48 = vpop.xlane.xlu0 %1131 }
 0x5d2   :  { %3485 = vrcp.f32 %v1132_v48  ;;  %v1134_v6 = vpop.xlane.xlu1 %1133 }
 0x5d3   :  { %3487 = vrcp.f32 %v1134_v6 }
 0x5d4   :  { %3489 = vrcp.f32 %v1136_v16 }
 0x5d5   :  { %v1138_v63 = vpop.xlane.xlu0 %1137 }
 0x5d6   :  { %3078 = vmatpush3.bf16.xpose.msra.mxu1 %v1396_v44  ;;  %3491 = vrcp.f32 %v1138_v63  ;;  %v1144_v3 = vpop.xlane.xlu1 %1143 }
 0x5d9   :  { %v1152_v14 = vpop.xlane.xlu0 %1151 }
 0x5da   :  { %v1140_v2 = vpop.xlane.xlu1 %1139 }
 0x5dc   :  { %v3486_v55 = vpop.eup %3485 }
 0x5dd   :  { %v3488_v32 = vpop.eup %3487  ;;  %v1148_v26 = vpop.xlane.xlu0 %1147  ;;  %v1164_v12 = vmul.f32 %v3486_v55, %v4338_v21 }
 0x5de   :  { %v3490_v45 = vpop.eup %3489  ;;  %v1146_v19 = vpop.xlane.xlu1 %1145  ;;  %v1166_v33 = vmul.f32 %v3488_v32, %v4340_v37 }
 0x5df   :  { %3493 = vrcp.f32 %v1146_v19  ;;  %v1168_v53 = vmul.f32 %v3490_v45, %v4332_v50 }
 0x5e0   :  { %v3492_v25 = vpop.eup %3491  ;;  %v1189_v35 = vpack.c.bf16 %v1166_v33, %v1164_v12  ;;  %3495 = vrcp.f32 %v1140_v2 }
 0x5e1   :  { %v1154_v46 = vpop.xlane.xlu0 %1153  ;;  %v1170_v34 = vmul.f32 %v3492_v25, %v4345_v62  ;;  %3497 = vrcp.f32 %v1144_v3 }
 0x5e2   :  { %v1142_v28 = vpop.xlane.xlu1 %1141  ;;  %3055 = vmatprep.mubr.bf16.mxu1 %v1189_v35 }
 0x5e3   :  { %3499 = vrcp.f32 %v1142_v28  ;;  %v1190_v4 = vpack.c.bf16 %v1170_v34, %v1168_v53 }
 0x5e4   :  { %3501 = vrcp.f32 %v1148_v26 }
 0x5e5   :  { %3056 = vmatmul.mubr.bf16.gmra.mrb[36].mxu1 %v1190_v4  ;;  %v1353_v21 = vpop.permute.xlu0 %1352 }
 0x5e6   :  { %v1150_v41 = vpop.xlane.xlu1 %1149  ;;  %3237 = vmatprep.subr.msk.bf16.mxu1 %vm455_vm1, %v1353_v21  ;;  %v1399_v37 = vsel %vm455_vm1, %v1353_v21, 0 }
 0x5e7   :  { %3503 = vrcp.f32 %v1150_v41  ;;  %3080 = vmatpush3.bf16.xpose.msra.mxu1 %v1399_v37 }
 0x5e8   :  { %3505 = vrcp.f32 %v1154_v46 }
 0x5e9   :  { %v1325_v13 = vpop.permute.xlu0 %1324  ;;  %v3494_v50 = vpop.eup %3493  ;;  %3507 = vrcp.f32 %v1152_v14 }
 0x5ea   :  { %v1355_v62 = vpop.permute.xlu1 %1354  ;;  %v3496_v36 = vpop.eup %3495  ;;  %v1178_v6 = vmul.f32 %v3494_v50, %v4360_v52 }
 0x5eb   :  { %3238 = vmatprep.subr.msk.bf16.mxu1 %vm455_vm1, %v1355_v62  ;;  %v3498_v16 = vpop.eup %3497  ;;  %v1402_v63 = vsel %vm455_vm1, %v1355_v62, 0  ;;  %v1172_v3 = vmul.f32 %v3496_v36, %v4354_v54 }
 0x5ec   :  { %v1176_v14 = vmul.f32 %v3498_v16, %v4347_v1 }
 0x5ed   :  { %v3500_v27 = vpop.eup %3499  ;;  %v1329_v48 = vpop.permute.xlu0 %1328 }
 0x5ee   :  { %v1327_v44 = vpop.permute.xlu1 %1326  ;;  %v1174_v2 = vmul.f32 %v3500_v27, %v4366_v57  ;;  %v3502_v55 = vpop.eup %3501  ;;  %v1192_v45 = vpack.c.bf16 %v1178_v6, %v1176_v14 }
 0x5ef   :  { %3082 = vmatpush3.bf16.xpose.msra.mxu1 %v1402_v63  ;;  %v1180_v52 = vmul.f32 %v3502_v55, %v4358_v39  ;;  %v4565_v55 = vld [vmem:[%s5198_s6 + $0x28] sm:$0xff] }
 0x5f0   :  { %v1191_v32 = vpack.c.bf16 %v1174_v2, %v1172_v3 }
 0x5f1   :  { %v3504_v26 = vpop.eup %3503  ;;  %v1333_v12 = vpop.permute.xlu0 %1332 }
 0x5f2   :  { %v3506_v19 = vpop.eup %3505  ;;  %v1331_v33 = vpop.permute.xlu1 %1330  ;;  %3059 = vmatprep.mubr.bf16.mxu1 %v1191_v32  ;;  %v1182_v25 = vmul.f32 %v3504_v26, %v4370_v58 }
 0x5f3   :  { %3060 = vmatmul.mubr.bf16.gmra.mrb[40].mxu1 %v1192_v45  ;;  %v3508_v35 = vpop.eup %3507  ;;  %v1186_v57 = vmul.f32 %v3506_v19, %v4364_v18  ;;  %v4556_v19 = vld [vmem:[%s5198_s6 + $0x30] sm:$0xff] }
 0x5f4   :  { %v1193_v54 = vpack.c.bf16 %v1182_v25, %v1180_v52  ;;  %v1184_v1 = vmul.f32 %v3508_v35, %v4352_v20 }
 0x5f5   :  { %v1337_v46 = vpop.permute.xlu0 %1336 }
 0x5f6   :  { %v1335_v53 = vpop.permute.xlu1 %1334  ;;  %3063 = vmatprep.mubr.bf16.mxu1 %v1193_v54  ;;  %v1194_v28 = vpack.c.bf16 %v1186_v57, %v1184_v1 }
 0x5f9   :  { %v1654_v34 = vpop.permute.xlu0 %1653 }
 0x5fa   :  { %v1339_v4 = vpop.permute.xlu1 %1338  ;;  %3099 = vmatprep.subr.bf16.mxu0 %v1654_v34 }
 0x5fb   :  { %3064 = vmatmul.mubr.bf16.gmra.mrb[44].mxu1 %v1194_v28  ;;  %3100 = vmatpush3.bf16.msra.mxu0 %v1654_v34 }
 0x5fc   :  { %3083 = vmatprep.mubr.msk.bf16.mxu1 %vm455_vm1, %v1325_v13 }
 0x5fd   :  { %v1658_v58 = vpop.permute.xlu0 %1657 }
 0x5fe   :  { %v1656_v39 = vpop.permute.xlu1 %1655 }
 0x5ff   :  { %3101 = vmatprep.subr.bf16.mxu0 %v1656_v39 }
 0x600   :  { %3102 = vmatpush3.bf16.msra.mxu0 %v1656_v39  ;;  %v4521_v39 = vld [vmem:[%s5198_s6 + $0x8] sm:$0xff] }
 0x601   :  { %3103 = vmatprep.subr.bf16.mxu0 %v1658_v58  ;;  %v1662_v20 = vpop.permute.xlu0 %1661 }
 0x602   :  { %v1660_v18 = vpop.permute.xlu1 %1659 }
 0x603   :  { %3084 = vmatmul.mubr.msk.bf16.vlgmr.msra.gmra.mrb[48].mxu1 %vm455_vm1, %v1327_v44 }
 0x604   :  { %3087 = vmatprep.mubr.msk.bf16.mxu1 %vm455_vm1, %v1329_v48  ;;  %3104 = vmatpush3.bf16.msra.mxu0 %v1658_v58 }
 0x605   :  { %3105 = vmatprep.subr.bf16.mxu0 %v1660_v18  ;;  %v1666_v41 = vpop.permute.xlu0 %1665 }
 0x606   :  { %v1664_v21 = vpop.permute.xlu1 %1663 }
 0x608   :  { %3106 = vmatpush3.bf16.msra.mxu0 %v1660_v18  ;;  %v4529_v18 = vld [vmem:[%s5198_s6] sm:$0xff] }
 0x609   :  { %3107 = vmatprep.subr.bf16.mxu0 %v1662_v20  ;;  %v4456_v13 = vpop.permute.xlu0 %1790 }
 0x60a   :  { %v1668_v37 = vpop.permute.xlu1 %1667 }
 0x60b   :  { %3088 = vmatmul.mubr.msk.bf16.gmra.mrb[52].mxu1 %vm455_vm1, %v1331_v33 }
 0x60c   :  { %3091 = vmatprep.mubr.msk.bf16.mxu1 %vm455_vm1, %v1333_v12  ;;  %3108 = vmatpush3.bf16.msra.mxu0 %v1662_v20  ;;  %v4574_v12 = vld [vmem:[%s5198_s6 + $0x20] sm:$0xff] }
 0x60d   :  { %3109 = vmatprep.subr.bf16.mxu0 %v1664_v21 }
 0x610   :  { %3110 = vmatpush3.bf16.msra.mxu0 %v1664_v21 }
 0x611   :  { %3111 = vmatprep.subr.bf16.mxu0 %v1666_v41 }
 0x613   :  { %3092 = vmatmul.mubr.msk.bf16.gmra.mrb[56].mxu1 %vm455_vm1, %v1335_v53  ;;  %v4512_v53 = vld [vmem:[%s5198_s6 + $0x10] sm:$0xff] }
 0x614   :  { %3095 = vmatprep.mubr.msk.bf16.mxu1 %vm455_vm1, %v1337_v46  ;;  %3112 = vmatpush3.bf16.msra.mxu0 %v1666_v41  ;;  %v4539_v41 = vld [vmem:[%s5198_s6 + $0x18] sm:$0xff] }
 0x615   :  { %3113 = vmatprep.subr.bf16.mxu0 %v1668_v37 }
 0x618   :  { %3114 = vmatpush3.bf16.msra.mxu0 %v1668_v37 }
 0x619   :  { %3239 = vmatprep.subr.msk.bf16.mxu0 %vm455_vm1, %v4456_v13 }
 0x61b   :  { %3096 = vmatmul.mubr.msk.bf16.gmra.mrb[60].mxu1 %vm455_vm1, %v1339_v4 }
 0x680   :  { %v4461_v50 = vpop.f32.mrb[32].mxu1 }
 0x681   :  { %5287 = vst [vmem:[#allocation10_spill] sm:$0xff] %v4461_v50  ;;  %v4463_v62 = vpop.f32.mrb[33].mxu1 }
 0x682   :  { %5288 = vst [vmem:[#allocation12_spill] sm:$0xff] %v4463_v62  ;;  %v4465_v36 = vpop.f32.mrb[34].mxu1 }
 0x683   :  { %5289 = vst [vmem:[#allocation11_spill] sm:$0xff] %v4465_v36  ;;  %v4469_v27 = vpop.f32.mrb[35].mxu1 }
 0x684   :  { %5290 = vst [vmem:[#allocation14_spill] sm:$0xff] %v4469_v27 }
 0x6b8   :  { %v4473_v6 = vpop.f32.mrb[36].mxu1 }
 0x6b9   :  { %5291 = vst [vmem:[#allocation13_spill] sm:$0xff] %v4473_v6  ;;  %v4475_v44 = vpop.f32.mrb[37].mxu1 }
 0x6ba   :  { %5292 = vst [vmem:[#allocation15_spill] sm:$0xff] %v4475_v44  ;;  %v4477_v63 = vpop.f32.mrb[38].mxu1 }
 0x6bb   :  { %5293 = vst [vmem:[#allocation16_spill] sm:$0xff] %v4477_v63  ;;  %v4481_v2 = vpop.f32.mrb[39].mxu1 }
 0x6bc   :  { %5294 = vst [vmem:[#allocation2_spill] sm:$0xff] %v4481_v2 }
 0x6c6   :  { %v4485_v14 = vpop.f32.mrb[40].mxu1 }
 0x6c7   :  { %5295 = vst [vmem:[#allocation3_spill] sm:$0xff] %v4485_v14  ;;  %v4487_v32 = vpop.f32.mrb[41].mxu1 }
 0x6c8   :  { %5296 = vst [vmem:[#allocation17_spill] sm:$0xff] %v4487_v32  ;;  %v4489_v26 = vpop.f32.mrb[42].mxu1 }
 0x6c9   :  { %5297 = vst [vmem:[#allocation18_spill] sm:$0xff] %v4489_v26  ;;  %v4493_v45 = vpop.f32.mrb[43].mxu1 }
 0x6ca   :  { %5298 = vst [vmem:[#allocation5_spill] sm:$0xff] %v4493_v45 }
 0x6ce   :  { %v4497_v33 = vpop.f32.mrb[44].mxu1 }
 0x6cf   :  { %5299 = vst [vmem:[#allocation4_spill] sm:$0xff] %v4497_v33  ;;  %v4499_v52 = vpop.f32.mrb[45].mxu1 }
 0x6d0   :  { %5300 = vst [vmem:[#allocation35_spill] sm:$0xff] %v4499_v52  ;;  %v4501_v25 = vpop.f32.mrb[46].mxu1 }
 0x6d1   :  { %5301 = vst [vmem:[#allocation36_spill] sm:$0xff] %v4501_v25  ;;  %v4505_v54 = vpop.f32.mrb[47].mxu1 }
 0x6d2   :  { %5302 = vst [vmem:[#allocation37_spill] sm:$0xff] %v4505_v54  ;;  %v4610_v54 = vld [vmem:[%s5198_s6 + $0x40] sm:$0xff] }
 0x6d6   :  { %v3085_v57 = vpop.f32.mrb[48].mxu1 }
 0x6d7   :  { %v4515_v1 = vadd.f32 %v4512_v53, %v3085_v57  ;;  %v1438_v34 = vpop.f32.mrb[49].mxu1 }
 0x6d8   :  { %v3086_v28 = vpop.f32.mrb[50].mxu1  ;;  %v4532_v20 = vadd.f32 %v4529_v18, %v1438_v34  ;;  %v4547_v34 = vld [vmem:[%s5198_s6 + $0x38] sm:$0xff] }
 0x6d9   :  { %1505 = vmax.xlane.f32.xlu0 %v4515_v1  ;;  %v1441_v4 = vpop.f32.mrb[51].mxu1  ;;  %v4542_v37 = vadd.f32 %v4539_v41, %v3086_v28 }
 0x6da   :  { %v4524_v58 = vadd.f32 %v4521_v39, %v1441_v4 }
 0x6dc   :  { %1503 = vmax.xlane.f32.xlu1 %v4524_v58 }
 0x6dd   :  { %1501 = vmax.xlane.f32.xlu0 %v4532_v20 }
 0x6de   :  { %v3089_v21 = vpop.f32.mrb[52].mxu1 }
 0x6df   :  { %v1454_v57 = vpop.f32.mrb[53].mxu1  ;;  %v4559_v28 = vadd.f32 %v4556_v19, %v3089_v21 }
 0x6e0   :  { %v3090_v4 = vpop.f32.mrb[54].mxu1  ;;  %v4577_v21 = vadd.f32 %v4574_v12, %v1454_v57  ;;  %v4592_v57 = vld [vmem:[%s5198_s6 + $0x50] sm:$0xff] }
 0x6e1   :  { %v4550_v46 = vadd.f32 %v4547_v34, %v3090_v4  ;;  %1507 = vmax.xlane.f32.xlu0 %v4542_v37  ;;  %v1457_v35 = vpop.f32.mrb[55].mxu1 }
 0x6e2   :  { %v4568_v4 = vadd.f32 %v4565_v55, %v1457_v35  ;;  %v4583_v35 = vld [vmem:[%s5198_s6 + $0x58] sm:$0xff] }
 0x6e3   :  { %1515 = vmax.xlane.f32.xlu1 %v4550_v46 }
 0x6e5   :  { %1513 = vmax.xlane.f32.xlu0 %v4559_v28 }
 0x6e6   :  { %v3093_v48 = vpop.f32.mrb[56].mxu1 }
 0x6e7   :  { %1511 = vmax.xlane.f32.xlu1 %v4568_v4  ;;  %v1470_v3 = vpop.f32.mrb[57].mxu1  ;;  %v4595_v8 = vadd.f32 %v4592_v57, %v3093_v48 }
 0x6e8   :  { %v3094_v16 = vpop.f32.mrb[58].mxu1  ;;  %v4613_v48 = vadd.f32 %v4610_v54, %v1470_v3  ;;  %v4629_v3 = vld [vmem:[%s5198_s6 + $0x60] sm:$0xff] }
 0x6e9   :  { %v4586_v59 = vadd.f32 %v4583_v35, %v3094_v16  ;;  %1509 = vmax.xlane.f32.xlu0 %v4577_v21  ;;  %v1473_v42 = vpop.f32.mrb[59].mxu1 }
 0x6ea   :  { %v4604_v16 = vadd.f32 %v4601_v30, %v1473_v42  ;;  %v4620_v42 = vld [vmem:[%s5198_s6 + $0x70] sm:$0xff] }
 0x6eb   :  { %1523 = vmax.xlane.f32.xlu1 %v4586_v59 }
 0x6ed   :  { %1521 = vmax.xlane.f32.xlu0 %v4595_v8 }
 0x6ee   :  { %v3097_v52 = vpop.f32.mrb[60].mxu1 }
 0x6ef   :  { %1519 = vmax.xlane.f32.xlu1 %v4604_v16  ;;  %v1486_v33 = vpop.f32.mrb[61].mxu1  ;;  %v4623_v45 = vadd.f32 %v4620_v42, %v3097_v52  ;;  %v4642_v52 = vld [vmem:[%s5198_s6 + $0x78] sm:$0xff] }
 0x6f0   :  { %v3098_v25 = vpop.f32.mrb[62].mxu1  ;;  %v4632_v44 = vadd.f32 %v4629_v3, %v1486_v33  ;;  %5303 = vst [vmem:[#allocation38_spill] sm:$0xff] %v4642_v52  ;;  %v4651_v33 = vld [vmem:[%s5198_s6 + $0x68] sm:$0xff]  ;;  %s3656_s6 = smov 8  }
 0x6f1   :  { %1517 = vmax.xlane.f32.xlu0 %v4613_v48  ;;  %v1489_v32 = vpop.f32.mrb[63].mxu1  ;;  %v4645_v2 = vadd.f32 %v4642_v52, %v3098_v25  ;;  %5304 = vst [vmem:[#allocation39_spill] sm:$0xff] %v4651_v33 }
 0x6f5   :  { %1529 = vmax.xlane.f32.xlu0 %v4623_v45 }
 0x6f9   :  { %1525 = vmax.xlane.f32.xlu0 %v4632_v44 }
 0x700   :  { %1796 = vrot.lane.b32.xlu1 %v5281_v11, %s3655_s0  ;;  %v4654_v11 = vadd.f32 %v4651_v33, %v1489_v32 }
 0x70f   :  { %1794 = vrot.lane.b32.xlu0 %v5282_v0, %s3655_s0  ;;  %v4657_v0 = vpop.permute.xlu1 %1792 }
 0x724   :  { %1531 = vmax.xlane.f32.xlu1 %v4645_v2 }
 0x728   :  { %1527 = vmax.xlane.f32.xlu1 %v4654_v11 }
 0x766   :  { %v1506_v62 = vpop.xlane.xlu0 %1505 }
 0x767   :  { %v1535_v27 = vsub.f32 %v4515_v1, %v1506_v62 }
 0x769   :  { %v1553_v14 = vmul.f32 1.442695, %v1535_v27  ;;  %v1504_v25 = vpop.xlane.xlu1 %1503 }
 0x76a   :  { %v1534_v26 = vsub.f32 %v4524_v58, %v1504_v25  ;;  %v1502_v6 = vpop.xlane.xlu0 %1501 }
 0x76b   :  { %3509 = vpow2.f32 %v1553_v14  ;;  %v1533_v63 = vsub.f32 %v4532_v20, %v1502_v6 }
 0x76c   :  { %v1551_v51 = vmul.f32 1.442695, %v1534_v26 }
 0x76d   :  { %v1549_v50 = vmul.f32 1.442695, %v1533_v63 }
 0x76e   :  { %3511 = vpow2.f32 %v1551_v51  ;;  %v1508_v32 = vpop.xlane.xlu0 %1507 }
 0x76f   :  { %3513 = vpow2.f32 %v1549_v50  ;;  %v1536_v36 = vsub.f32 %v4542_v37, %v1508_v32 }
 0x770   :  { %v1516_v50 = vpop.xlane.xlu1 %1515 }
 0x771   :  { %v1555_v49 = vmul.f32 1.442695, %v1536_v36  ;;  %v1540_v32 = vsub.f32 %v4550_v46, %v1516_v50 }
 0x772   :  { %v1514_v51 = vpop.xlane.xlu0 %1513 }
 0x773   :  { %3515 = vpow2.f32 %v1555_v49  ;;  %v1539_v63 = vsub.f32 %v4559_v28, %v1514_v51  ;;  %v1563_v52 = vmul.f32 1.442695, %v1540_v32 }
 0x774   :  { %v1512_v14 = vpop.xlane.xlu1 %1511 }
 0x775   :  { %v4663_v38 = vpop.eup %3509  ;;  %v1561_v1 = vmul.f32 1.442695, %v1539_v63  ;;  %v1538_v20 = vsub.f32 %v4568_v4, %v1512_v14 }
 0x776   :  { %1585 = vadd.xlane.f32.xlu1 %v4663_v38  ;;  %v1510_v49 = vpop.xlane.xlu0 %1509 }
 0x777   :  { %v1537_v58 = vsub.f32 %v4577_v21, %v1510_v49  ;;  %3517 = vpow2.f32 %v1561_v1  ;;  %v1559_v33 = vmul.f32 1.442695, %v1538_v20 }
 0x778   :  { %v4666_v62 = vpop.eup %3511  ;;  %v1524_v37 = vpop.xlane.xlu1 %1523 }
 0x779   :  { %v4668_v27 = vpop.eup %3513  ;;  %1583 = vadd.xlane.f32.xlu0 %v4666_v62  ;;  %v1544_v46 = vsub.f32 %v4586_v59, %v1524_v37 }
 0x77a   :  { %1581 = vadd.xlane.f32.xlu1 %v4668_v27  ;;  %v1522_v36 = vpop.xlane.xlu0 %1521 }
 0x77c   :  { %v1520_v29 = vpop.xlane.xlu1 %1519 }
 0x77d   :  { %v4672_v6 = vpop.eup %3515 }
 0x77e   :  { %1587 = vadd.xlane.f32.xlu1 %v4672_v6  ;;  %v1518_v26 = vpop.xlane.xlu0 %1517 }
 0x77f   :  { %v1541_v21 = vsub.f32 %v4613_v48, %v1518_v26  ;;  %v1542_v48 = vsub.f32 %v4604_v16, %v1520_v29 }
 0x781   :  { %v1565_v50 = vmul.f32 1.442695, %v1541_v21  ;;  %v4688_v14 = vpop.eup %3517  ;;  %v1567_v26 = vmul.f32 1.442695, %v1542_v48 }
 0x782   :  { %v1530_v25 = vpop.xlane.xlu0 %1529 }
 0x783   :  { %v1547_v28 = vsub.f32 %v4623_v45, %v1530_v25 }
 0x785   :  { %v1577_v4 = vmul.f32 1.442695, %v1547_v28 }
 0x786   :  { %v1526_v49 = vpop.xlane.xlu0 %1525 }
 0x787   :  { %v1545_v63 = vsub.f32 %v4632_v44, %v1526_v49  ;;  %v1831_v49 = vsel %vm455_vm1, %v4456_v13, 0 }
 0x789   :  { %v1573_v45 = vmul.f32 1.442695, %v1545_v63 }
 0x78f   :  { %1798 = vrot.lane.b32.xlu0 %v5285_v23, %s3655_s0  ;;  %1800 = vrot.lane.b32.xlu1 %v5286_v61, %s3655_s0  ;;  %v1557_v23 = vmul.f32 1.442695, %v1537_v58  ;;  %v1543_v61 = vsub.f32 %v4595_v8, %v1522_v36  ;;  %v4690_v8 = vpop.permute.xlu1 %1796 }
 0x791   :  { %3519 = vpow2.f32 %v1557_v23  ;;  %v1569_v51 = vmul.f32 1.442695, %v1543_v61 }
 0x792   :  { %3521 = vpow2.f32 %v1559_v33  ;;  %v1571_v33 = vmul.f32 1.442695, %v1544_v46 }
 0x793   :  { %3523 = vpow2.f32 %v1563_v52 }
 0x794   :  { %3525 = vpow2.f32 %v1569_v51 }
 0x795   :  { %3527 = vpow2.f32 %v1577_v4 }
 0x796   :  { %3529 = vpow2.f32 %v1565_v50 }
 0x797   :  { %3531 = vpow2.f32 %v1573_v45 }
 0x798   :  { %3533 = vpow2.f32 %v1571_v33 }
 0x79b   :  { %v4694_v52 = vpop.eup %3519 }
 0x79c   :  { %v4696_v44 = vpop.eup %3521 }
 0x79d   :  { %v4701_v58 = vpop.eup %3523 }
 0x79e   :  { %v4703_v29 = vpop.eup %3525 }
 0x79f   :  { %v4708_v37 = vpop.eup %3527 }
 0x7a0   :  { %v4710_v25 = vpop.eup %3529 }
 0x7a1   :  { %v4714_v32 = vpop.eup %3531 }
 0x7a2   :  { %v4716_v23 = vpop.eup %3533 }
 0x7ae   :  { %1593 = vadd.xlane.f32.xlu0 %v4688_v14 }
 0x7b1   :  { %v1532_v36 = vpop.xlane.xlu1 %1531 }
 0x7b2   :  { %v1548_v59 = vsub.f32 %v4645_v2, %v1532_v36  ;;  %1589 = vadd.xlane.f32.xlu0 %v4694_v52 }
 0x7b3   :  { %1591 = vadd.xlane.f32.xlu1 %v4696_v44 }
 0x7b4   :  { %v1579_v1 = vmul.f32 1.442695, %v1548_v59 }
 0x7b5   :  { %v1528_v20 = vpop.xlane.xlu1 %1527 }
 0x7b6   :  { %3535 = vpow2.f32 %v1579_v1  ;;  %v1546_v16 = vsub.f32 %v4654_v11, %v1528_v20  ;;  %1595 = vadd.xlane.f32.xlu0 %v4701_v58 }
 0x7b7   :  { %1601 = vadd.xlane.f32.xlu1 %v4703_v29  ;;  %3537 = vpow2.f32 %v1567_v26 }
 0x7b8   :  { %v1575_v2 = vmul.f32 1.442695, %v1546_v16 }
 0x7ba   :  { %1609 = vadd.xlane.f32.xlu0 %v4708_v37  ;;  %3539 = vpow2.f32 %v1575_v2 }
 0x7bb   :  { %1597 = vadd.xlane.f32.xlu1 %v4710_v25 }
 0x7be   :  { %1605 = vadd.xlane.f32.xlu0 %v4714_v32 }
 0x7bf   :  { %1603 = vadd.xlane.f32.xlu1 %v4716_v23 }
 0x7c0   :  { %v4720_v11 = vpop.eup %3535 }
 0x7c1   :  { %v4722_v61 = vpop.eup %3537 }
 0x7c2   :  { %1611 = vadd.xlane.f32.xlu0 %v4720_v11 }
 0x7c3   :  { %1599 = vadd.xlane.f32.xlu1 %v4722_v61 }
 0x7c4   :  { %v4726_v28 = vpop.eup %3539 }
 0x7c7   :  { %1607 = vadd.xlane.f32.xlu1 %v4726_v28 }
 0x7d8   :  { %1804 = vrot.lane.b32.xlu1 %v3831_v7, %s3655_s0  ;;  %1802 = vrot.lane.b32.xlu0 %v3835_v10, %s3655_s0 }
 0x7dc   :  { %1776 = vrot.lane.b32.xlu1 %v3803_v43, %s3655_s0  ;;  %1774 = vrot.lane.b32.xlu0 %v3807_v47, %s3655_s0  ;;  %v1795_v43 = vpop.permute.xlu0 %1794 }
 0x7e0   :  { %1780 = vrot.lane.b32.xlu1 %v3817_v56, %s3655_s0  ;;  %1778 = vrot.lane.b32.xlu0 %v3821_v60, %s3655_s0 }
 0x7e4   :  { %1784 = vrot.lane.b32.xlu1 %v3829_v5, %s3655_s0  ;;  %1782 = vrot.lane.b32.xlu0 %v3833_v9, %s3655_s0 }
 0x7e8   :  { %1788 = vrot.lane.b32.xlu1 %v3841_v15, %s3655_s0  ;;  %1786 = vrot.lane.b32.xlu0 %v3843_v17, %s3655_s0 }
 0x7ec   :  { %2105 = vrot.lane.b32.xlu1 %v3849_v22, %s3655_s0  ;;  %2103 = vrot.lane.b32.xlu0 %v3851_v24, %s3655_s0 }
 0x7f0   :  { %2107 = vrot.lane.b32.xlu0 %v3863_v31, %s3655_s0 }
 0x803   :  { %v1586_v47 = vpop.xlane.xlu1 %1585 }
 0x806   :  { %v1584_v56 = vpop.xlane.xlu0 %1583 }
 0x807   :  { %3541 = vrcp.f32 %v1584_v56  ;;  %v1582_v60 = vpop.xlane.xlu1 %1581 }
 0x808   :  { %3543 = vrcp.f32 %v1582_v60 }
 0x809   :  { %3545 = vrcp.f32 %v1586_v47 }
 0x80a   :  { %v1799_v13 = vpop.permute.xlu0 %1798 }
 0x80b   :  { %v1588_v5 = vpop.xlane.xlu1 %1587 }
 0x80c   :  { %3547 = vrcp.f32 %v1588_v5 }
 0x811   :  { %v3542_v7 = vpop.eup %3541 }
 0x812   :  { %v3544_v9 = vpop.eup %3543  ;;  %v1616_v10 = vmul.f32 %v3542_v7, %v4666_v62  ;;  %v1834_v62 = vsel %vm455_vm1, %v4657_v0, 0 }
 0x813   :  { %v1614_v15 = vmul.f32 %v3544_v9, %v4668_v27  ;;  %v3546_v17 = vpop.eup %3545  ;;  %v1840_v27 = vsel %vm455_vm1, %v4690_v8, 0 }
 0x814   :  { %v1618_v31 = vmul.f32 %v3546_v17, %v4663_v38  ;;  %v1837_v38 = vsel %vm455_vm1, %v1795_v43, 0 }
 0x815   :  { %v1645_v22 = vpack.c.bf16 %v1616_v10, %v1614_v15 }
 0x816   :  { %v3548_v24 = vpop.eup %3547 }
 0x817   :  { %v1620_v51 = vmul.f32 %v3548_v24, %v4672_v6  ;;  %3115 = vmatprep.mubr.bf16.mxu0 %v1645_v22  ;;  %v1843_v6 = vsel %vm455_vm1, %v1799_v13, 0 }
 0x819   :  { %v1646_v21 = vpack.c.bf16 %v1620_v51, %v1618_v31 }
 0x81b   :  { %3116 = vmatmul.mubr.bf16.vlgmr.msra.gmra.mrb[64].mxu0 %v1646_v21 }
 0x81c   :  { %3132 = vmatpush3.bf16.xpose.msra.mxu0 %v1831_v49 }
 0x81d   :  { %3240 = vmatprep.subr.msk.bf16.mxu0 %vm455_vm1, %v4657_v0  ;;  %v1801_v0 = vpop.permute.xlu1 %1800 }
 0x81e   :  { %v1846_v50 = vsel %vm455_vm1, %v1801_v0, 0 }
 0x824   :  { %3134 = vmatpush3.bf16.xpose.msra.mxu0 %v1834_v62 }
 0x825   :  { %3241 = vmatprep.subr.msk.bf16.mxu0 %vm455_vm1, %v1795_v43 }
 0x82c   :  { %3136 = vmatpush3.bf16.xpose.msra.mxu0 %v1837_v38 }
 0x82d   :  { %3242 = vmatprep.subr.msk.bf16.mxu0 %vm455_vm1, %v4690_v8 }
 0x834   :  { %3138 = vmatpush3.bf16.xpose.msra.mxu0 %v1840_v27 }
 0x835   :  { %3243 = vmatprep.subr.msk.bf16.mxu0 %vm455_vm1, %v1799_v13 }
 0x83b   :  { %v1594_v4 = vpop.xlane.xlu0 %1593 }
 0x83c   :  { %3140 = vmatpush3.bf16.xpose.msra.mxu0 %v1843_v6 }
 0x83d   :  { %3244 = vmatprep.subr.msk.bf16.mxu0 %vm455_vm1, %v1801_v0 }
 0x83f   :  { %v1590_v63 = vpop.xlane.xlu0 %1589 }
 0x840   :  { %3549 = vrcp.f32 %v1590_v63  ;;  %v1592_v46 = vpop.xlane.xlu1 %1591 }
 0x841   :  { %3551 = vrcp.f32 %v1592_v46 }
 0x842   :  { %3553 = vrcp.f32 %v1594_v4 }
 0x843   :  { %v1596_v45 = vpop.xlane.xlu0 %1595 }
 0x844   :  { %3142 = vmatpush3.bf16.xpose.msra.mxu0 %v1846_v50  ;;  %3555 = vrcp.f32 %v1596_v45  ;;  %v1602_v8 = vpop.xlane.xlu1 %1601 }
 0x847   :  { %v1610_v33 = vpop.xlane.xlu0 %1609 }
 0x848   :  { %v1598_v48 = vpop.xlane.xlu1 %1597 }
 0x84a   :  { %v3550_v36 = vpop.eup %3549 }
 0x84b   :  { %v3552_v59 = vpop.eup %3551  ;;  %v1606_v26 = vpop.xlane.xlu0 %1605  ;;  %v1622_v1 = vmul.f32 %v3550_v36, %v4694_v52 }
 0x84c   :  { %v3554_v20 = vpop.eup %3553  ;;  %v1604_v16 = vpop.xlane.xlu1 %1603  ;;  %v1624_v2 = vmul.f32 %v3552_v59, %v4696_v44 }
 0x84d   :  { %3557 = vrcp.f32 %v1604_v16  ;;  %v1626_v60 = vmul.f32 %v3554_v20, %v4688_v14 }
 0x84e   :  { %v3556_v43 = vpop.eup %3555  ;;  %v1647_v47 = vpack.c.bf16 %v1624_v2, %v1622_v1  ;;  %3559 = vrcp.f32 %v1598_v48 }
 0x84f   :  { %v1612_v56 = vpop.xlane.xlu0 %1611  ;;  %v1628_v5 = vmul.f32 %v3556_v43, %v4701_v58  ;;  %3561 = vrcp.f32 %v1602_v8 }
 0x850   :  { %v1600_v7 = vpop.xlane.xlu1 %1599  ;;  %3119 = vmatprep.mubr.bf16.mxu0 %v1647_v47 }
 0x851   :  { %3563 = vrcp.f32 %v1600_v7  ;;  %v1648_v9 = vpack.c.bf16 %v1628_v5, %v1626_v60 }
 0x852   :  { %3565 = vrcp.f32 %v1606_v26 }
 0x853   :  { %3120 = vmatmul.mubr.bf16.gmra.mrb[68].mxu0 %v1648_v9  ;;  %v1803_v52 = vpop.permute.xlu0 %1802 }
 0x854   :  { %v1849_v10 = vsel %vm455_vm1, %v1803_v52, 0  ;;  %v1608_v44 = vpop.xlane.xlu1 %1607  ;;  %3245 = vmatprep.subr.msk.bf16.mxu0 %vm455_vm1, %v1803_v52 }
 0x855   :  { %3567 = vrcp.f32 %v1608_v44  ;;  %3144 = vmatpush3.bf16.xpose.msra.mxu0 %v1849_v10 }
 0x856   :  { %3569 = vrcp.f32 %v1612_v56 }
 0x857   :  { %v1775_v15 = vpop.permute.xlu0 %1774  ;;  %v3558_v14 = vpop.eup %3557  ;;  %3571 = vrcp.f32 %v1610_v33 }
 0x858   :  { %v1805_v58 = vpop.permute.xlu1 %1804  ;;  %v3560_v17 = vpop.eup %3559  ;;  %v1636_v51 = vmul.f32 %v3558_v14, %v4716_v23 }
 0x859   :  { %3246 = vmatprep.subr.msk.bf16.mxu0 %vm455_vm1, %v1805_v58  ;;  %v3562_v22 = vpop.eup %3561  ;;  %v1852_v21 = vsel %vm455_vm1, %v1805_v58, 0  ;;  %v1630_v62 = vmul.f32 %v3560_v17, %v4710_v25 }
 0x85a   :  { %v1634_v13 = vmul.f32 %v3562_v22, %v4703_v29 }
 0x85b   :  { %v3564_v24 = vpop.eup %3563  ;;  %v1779_v31 = vpop.permute.xlu0 %1778 }
 0x85c   :  { %v1777_v49 = vpop.permute.xlu1 %1776  ;;  %v1632_v38 = vmul.f32 %v3564_v24, %v4722_v61  ;;  %v3566_v27 = vpop.eup %3565  ;;  %v1650_v63 = vpack.c.bf16 %v1636_v51, %v1634_v13 }
 0x85d   :  { %3146 = vmatpush3.bf16.xpose.msra.mxu0 %v1852_v21  ;;  %v1638_v23 = vmul.f32 %v3566_v27, %v4714_v32 }
 0x85e   :  { %v1649_v6 = vpack.c.bf16 %v1632_v38, %v1630_v62 }
 0x85f   :  { %v3568_v4 = vpop.eup %3567  ;;  %v1783_v0 = vpop.permute.xlu0 %1782 }
 0x860   :  { %v3570_v46 = vpop.eup %3569  ;;  %v1781_v50 = vpop.permute.xlu1 %1780  ;;  %3123 = vmatprep.mubr.bf16.mxu0 %v1649_v6  ;;  %v1640_v45 = vmul.f32 %v3568_v4, %v4726_v28 }
 0x861   :  { %3124 = vmatmul.mubr.bf16.gmra.mrb[72].mxu0 %v1650_v63  ;;  %v3572_v8 = vpop.eup %3571  ;;  %v1644_v61 = vmul.f32 %v3570_v46, %v4720_v11 }
 0x862   :  { %v1651_v25 = vpack.c.bf16 %v1640_v45, %v1638_v23  ;;  %v1642_v29 = vmul.f32 %v3572_v8, %v4708_v37 }
 0x863   :  { %v1787_v33 = vpop.permute.xlu0 %1786 }
 0x864   :  { %v1785_v48 = vpop.permute.xlu1 %1784  ;;  %3127 = vmatprep.mubr.bf16.mxu0 %v1651_v25  ;;  %v1652_v59 = vpack.c.bf16 %v1644_v61, %v1642_v29 }
 0x867   :  { %v2104_v36 = vpop.permute.xlu0 %2103 }
 0x868   :  { %v1789_v26 = vpop.permute.xlu1 %1788  ;;  %3163 = vmatprep.subr.bf16.mxu1 %v2104_v36 }
 0x869   :  { %3128 = vmatmul.mubr.bf16.gmra.mrb[76].mxu0 %v1652_v59  ;;  %3164 = vmatpush3.bf16.msra.mxu1 %v2104_v36 }
 0x86a   :  { %3147 = vmatprep.mubr.msk.bf16.mxu0 %vm455_vm1, %v1775_v15 }
 0x86b   :  { %v2108_v28 = vpop.permute.xlu0 %2107 }
 0x86c   :  { %v2106_v32 = vpop.permute.xlu1 %2105 }
 0x86d   :  { %3165 = vmatprep.subr.bf16.mxu1 %v2106_v32 }
 0x86e   :  { %3166 = vmatpush3.bf16.msra.mxu1 %v2106_v32 }
 0x86f   :  { %3167 = vmatprep.subr.bf16.mxu1 %v2108_v28 }
 0x871   :  { %3148 = vmatmul.mubr.msk.bf16.vlgmr.msra.gmra.mrb[80].mxu0 %vm455_vm1, %v1777_v49 }
 0x872   :  { %3151 = vmatprep.mubr.msk.bf16.mxu0 %vm455_vm1, %v1779_v31  ;;  %3168 = vmatpush3.bf16.msra.mxu1 %v2108_v28 }
 0x879   :  { %3152 = vmatmul.mubr.msk.bf16.gmra.mrb[84].mxu0 %vm455_vm1, %v1781_v50 }
 0x87a   :  { %3155 = vmatprep.mubr.msk.bf16.mxu0 %vm455_vm1, %v1783_v0 }
 0x881   :  { %3156 = vmatmul.mubr.msk.bf16.gmra.mrb[88].mxu0 %vm455_vm1, %v1785_v48 }
 0x882   :  { %3159 = vmatprep.mubr.msk.bf16.mxu0 %vm455_vm1, %v1787_v33 }
 0x889   :  { %3160 = vmatmul.mubr.msk.bf16.gmra.mrb[92].mxu0 %vm455_vm1, %v1789_v26 }
 0x8ee   :  { %v4799_v37 = vpop.f32.mrb[64].mxu0 }
 0x8ef   :  { %v4801_v11 = vpop.f32.mrb[65].mxu0 }
 0x8f0   :  { %v4803_v1 = vpop.f32.mrb[66].mxu0 }
 0x8f1   :  { %v3268_v20 = vpack.i.bf16 %v4803_v1, %v4799_v37  ;;  %v4807_v16 = vpop.f32.mrb[67].mxu0  ;;  %v5317_v1 = vld [vmem:[#allocation18_spill] sm:$0xff] }
 0x8f2   :  { %v3263_v2 = vpack.i.bf16 %v4807_v16, %v4801_v11 }
 0x926   :  { %v4811_v43 = vpop.f32.mrb[68].mxu0 }
 0x927   :  { %v4813_v47 = vpop.f32.mrb[69].mxu0 }
 0x928   :  { %v4815_v56 = vpop.f32.mrb[70].mxu0 }
 0x929   :  { %v3288_v60 = vpack.i.bf16 %v4815_v56, %v4811_v43  ;;  %v4819_v5 = vpop.f32.mrb[71].mxu0  ;;  %v5320_v43 = vld [vmem:[#allocation14_spill] sm:$0xff]  ;;  %v5321_v56 = vld [vmem:[#allocation12_spill] sm:$0xff] }
 0x92a   :  { %v3283_v7 = vpack.i.bf16 %v4819_v5, %v4813_v47 }
 0x934   :  { %v4823_v9 = vpop.f32.mrb[72].mxu0 }
 0x935   :  { %v4825_v52 = vpop.f32.mrb[73].mxu0 }
 0x936   :  { %v4827_v10 = vpop.f32.mrb[74].mxu0 }
 0x937   :  { %v3318_v44 = vpack.i.bf16 %v4827_v10, %v4823_v9  ;;  %v4831_v15 = vpop.f32.mrb[75].mxu0 }
 0x938   :  { %v3313_v14 = vpack.i.bf16 %v4831_v15, %v4825_v52 }
 0x93c   :  { %v4835_v58 = vpop.f32.mrb[76].mxu0 }
 0x93d   :  { %v4837_v17 = vpop.f32.mrb[77].mxu0 }
 0x93e   :  { %v4839_v22 = vpop.f32.mrb[78].mxu0 }
 0x93f   :  { %v3358_v24 = vpack.i.bf16 %v4839_v22, %v4835_v58  ;;  %v4843_v31 = vpop.f32.mrb[79].mxu0 }
 0x940   :  { %v3353_v51 = vpack.i.bf16 %v4843_v31, %v4837_v17 }
 0x944   :  { %v3149_v21 = vpop.f32.mrb[80].mxu0 }
 0x945   :  { %v1897_v49 = vadd.f32 %v4512_v53, %v3149_v21  ;;  %v1888_v62 = vpop.f32.mrb[81].mxu0 }
 0x946   :  { %v3150_v38 = vpop.f32.mrb[82].mxu0  ;;  %v1889_v6 = vadd.f32 %v4529_v18, %v1888_v62 }
 0x947   :  { %1955 = vmax.xlane.f32.xlu0 %v1897_v49  ;;  %v1891_v27 = vpop.f32.mrb[83].mxu0  ;;  %v1900_v0 = vadd.f32 %v4539_v41, %v3150_v38 }
 0x948   :  { %v1892_v13 = vadd.f32 %v4521_v39, %v1891_v27 }
 0x94a   :  { %1953 = vmax.xlane.f32.xlu1 %v1892_v13 }
 0x94b   :  { %1951 = vmax.xlane.f32.xlu0 %v1889_v6 }
 0x94c   :  { %v3153_v4 = vpop.f32.mrb[84].mxu0 }
 0x94d   :  { %v1904_v63 = vpop.f32.mrb[85].mxu0  ;;  %v1913_v23 = vadd.f32 %v4556_v19, %v3153_v4 }
 0x94e   :  { %v3154_v46 = vpop.f32.mrb[86].mxu0  ;;  %v1905_v45 = vadd.f32 %v4574_v12, %v1904_v63 }
 0x94f   :  { %v4852_v50 = vadd.f32 %v4547_v34, %v3154_v46  ;;  %1957 = vmax.xlane.f32.xlu0 %v1900_v0  ;;  %v1907_v53 = vpop.f32.mrb[87].mxu0 }
 0x950   :  { %v1908_v39 = vadd.f32 %v4565_v55, %v1907_v53 }
 0x951   :  { %1965 = vmax.xlane.f32.xlu1 %v4852_v50 }
 0x953   :  { %1963 = vmax.xlane.f32.xlu0 %v1913_v23 }
 0x954   :  { %v3157_v18 = vpop.f32.mrb[88].mxu0 }
 0x955   :  { %1961 = vmax.xlane.f32.xlu1 %v1908_v39  ;;  %v1920_v8 = vpop.f32.mrb[89].mxu0  ;;  %v1929_v33 = vadd.f32 %v4592_v57, %v3157_v18  ;;  %v5306_v57 = vld [vmem:[#allocation38_spill] sm:$0xff] }
 0x956   :  { %v3158_v41 = vpop.f32.mrb[90].mxu0  ;;  %v4867_v61 = vadd.f32 %v4610_v54, %v1920_v8  ;;  %v5305_v54 = vld [vmem:[#allocation6_spill] sm:$0xff] }
 0x957   :  { %v4859_v25 = vadd.f32 %v4583_v35, %v3158_v41  ;;  %1959 = vmax.xlane.f32.xlu0 %v1905_v45  ;;  %v1923_v34 = vpop.f32.mrb[91].mxu0 }
 0x958   :  { %v4864_v19 = vadd.f32 %v4601_v30, %v1923_v34 }
 0x959   :  { %1973 = vmax.xlane.f32.xlu1 %v4859_v25 }
 0x95b   :  { %1971 = vmax.xlane.f32.xlu0 %v1929_v33 }
 0x95c   :  { %v3161_v55 = vpop.f32.mrb[92].mxu0 }
 0x95d   :  { %1969 = vmax.xlane.f32.xlu1 %v4864_v19  ;;  %v1936_v12 = vpop.f32.mrb[93].mxu0  ;;  %v4872_v29 = vadd.f32 %v4620_v42, %v3161_v55  ;;  %v5307_v42 = vld [vmem:[#allocation39_spill] sm:$0xff] }
 0x95e   :  { %v3162_v48 = vpop.f32.mrb[94].mxu0  ;;  %v4876_v30 = vadd.f32 %v4629_v3, %v1936_v12  ;;  %v5308_v3 = vld [vmem:[#allocation7_spill] sm:$0xff] }
 0x95f   :  { %1967 = vmax.xlane.f32.xlu0 %v4867_v61  ;;  %v1939_v35 = vpop.f32.mrb[95].mxu0  ;;  %v4884_v36 = vadd.f32 %v5306_v57, %v3162_v48 }
 0x960   :  { %v4888_v59 = vadd.f32 %v5307_v42, %v1939_v35 }
 0x963   :  { %1979 = vmax.xlane.f32.xlu0 %v4872_v29 }
 0x967   :  { %1975 = vmax.xlane.f32.xlu0 %v4876_v30 }
 0x96e   :  { %2111 = vrot.lane.b32.xlu1 %v3875_v40, %s3655_s0 }
 0x97d   :  { %2109 = vrot.lane.b32.xlu0 %v5305_v54, %s3655_s0 }
 0x992   :  { %1981 = vmax.xlane.f32.xlu1 %v4884_v36 }
 0x996   :  { %1977 = vmax.xlane.f32.xlu1 %v4888_v59 }
 0x9a7   :  { %2113 = vrot.lane.b32.xlu1 %v5308_v3, %s3655_s0 }
 0x9d4   :  { %v1956_v26 = vpop.xlane.xlu0 %1955 }
 0x9d5   :  { %v1985_v32 = vsub.f32 %v1897_v49, %v1956_v26 }
 0x9d7   :  { %v2003_v28 = vmul.f32 1.442695, %v1985_v32  ;;  %v1954_v21 = vpop.xlane.xlu1 %1953 }
 0x9d8   :  { %v1952_v40 = vpop.xlane.xlu0 %1951  ;;  %v1984_v27 = vsub.f32 %v1892_v13, %v1954_v21 }
 0x9d9   :  { %3573 = vpow2.f32 %v2003_v28  ;;  %v1983_v62 = vsub.f32 %v1889_v6, %v1952_v40 }
 0x9da   :  { %v2001_v18 = vmul.f32 1.442695, %v1984_v27 }
 0x9db   :  { %v1999_v38 = vmul.f32 1.442695, %v1983_v62 }
 0x9dc   :  { %v1958_v4 = vpop.xlane.xlu0 %1957 }
 0x9dd   :  { %3575 = vpow2.f32 %v1999_v38  ;;  %v1986_v63 = vsub.f32 %v1900_v0, %v1958_v4 }
 0x9de   :  { %v1966_v46 = vpop.xlane.xlu1 %1965 }
 0x9df   :  { %v2005_v53 = vmul.f32 1.442695, %v1986_v63  ;;  %v1990_v13 = vsub.f32 %v4852_v50, %v1966_v46 }
 0x9e0   :  { %v1964_v8 = vpop.xlane.xlu0 %1963 }
 0x9e1   :  { %3577 = vpow2.f32 %v2005_v53  ;;  %v1989_v41 = vsub.f32 %v1913_v23, %v1964_v8  ;;  %v2013_v42 = vmul.f32 1.442695, %v1990_v13 }
 0x9e2   :  { %v1962_v34 = vpop.xlane.xlu1 %1961  ;;  %3579 = vpow2.f32 %v2001_v18 }
 0x9e3   :  { %v4893_v55 = vpop.eup %3573  ;;  %v2011_v49 = vmul.f32 1.442695, %v1989_v41  ;;  %v1988_v12 = vsub.f32 %v1908_v39, %v1962_v34 }
 0x9e4   :  { %2035 = vadd.xlane.f32.xlu1 %v4893_v55  ;;  %v1960_v6 = vpop.xlane.xlu0 %1959 }
 0x9e5   :  { %3581 = vpow2.f32 %v2011_v49  ;;  %v2009_v48 = vmul.f32 1.442695, %v1988_v12  ;;  %v1987_v0 = vsub.f32 %v1905_v45, %v1960_v6 }
 0x9e6   :  { %v1974_v57 = vpop.xlane.xlu1 %1973 }
 0x9e7   :  { %v4897_v35 = vpop.eup %3575  ;;  %v2007_v54 = vmul.f32 1.442695, %v1987_v0  ;;  %3583 = vpow2.f32 %v2009_v48  ;;  %v1994_v26 = vsub.f32 %v4859_v25, %v1974_v57  ;;  %v5309_v48 = vld [vmem:[#allocation8_spill] sm:$0xff]  ;;  %v5310_v0 = vld [vmem:[#allocation11_spill] sm:$0xff] }
 0x9e8   :  { %2031 = vadd.xlane.f32.xlu1 %v4897_v35  ;;  %v1972_v23 = vpop.xlane.xlu0 %1971 }
 0x9e9   :  { %3585 = vpow2.f32 %v2007_v54  ;;  %v1993_v39 = vsub.f32 %v1929_v33, %v1972_v23  ;;  %v2021_v38 = vmul.f32 1.442695, %v1994_v26  ;;  %v5311_v54 = vld [vmem:[#allocation10_spill] sm:$0xff]  ;;  %v5313_v23 = vld [vmem:[#allocation9_spill] sm:$0xff]  ;;  %v5314_v26 = vld [vmem:[#allocation16_spill] sm:$0xff] }
 0x9ea   :  { %3587 = vpow2.f32 %v2013_v42  ;;  %v1970_v45 = vpop.xlane.xlu1 %1969  ;;  %v5312_v57 = vpack.i.bf16 %v5310_v0, %v5311_v54 }
 0x9eb   :  { %v4900_v3 = vpop.eup %3577  ;;  %v2019_v32 = vmul.f32 1.442695, %v1993_v39  ;;  %v1992_v33 = vsub.f32 %v4864_v19, %v1970_v45 }
 0x9ec   :  { %2037 = vadd.xlane.f32.xlu1 %v4900_v3  ;;  %v1968_v50 = vpop.xlane.xlu0 %1967  ;;  %v4905_v40 = vpop.eup %3579 }
 0x9ed   :  { %v1991_v28 = vsub.f32 %v4867_v61, %v1968_v50  ;;  %3589 = vpow2.f32 %v2019_v32  ;;  %v2017_v46 = vmul.f32 1.442695, %v1992_v33  ;;  %v5315_v32 = vld [vmem:[#allocation13_spill] sm:$0xff] }
 0x9ee   :  { %v2112_v34 = vpop.permute.xlu1 %2111  ;;  %v5316_v50 = vpack.i.bf16 %v5314_v26, %v5315_v32 }
 0x9ef   :  { %v4907_v21 = vpop.eup %3581  ;;  %v2015_v62 = vmul.f32 1.442695, %v1991_v28 }
 0x9f0   :  { %2033 = vadd.xlane.f32.xlu1 %v4905_v40  ;;  %2043 = vadd.xlane.f32.xlu0 %v4907_v21  ;;  %v1980_v25 = vpop.xlane.xlu0 %1979 }
 0x9f1   :  { %3591 = vpow2.f32 %v2015_v62  ;;  %v1997_v27 = vsub.f32 %v4872_v29, %v1980_v25  ;;  %v4913_v4 = vpop.eup %3583  ;;  %v5326_v25 = vld [vmem:[#allocation5_spill] sm:$0xff] }
 0x9f2   :  { %3593 = vpow2.f32 %v2021_v38  ;;  %v5324_v38 = vld [vmem:[#allocation15_spill] sm:$0xff] }
 0x9f3   :  { %v4915_v61 = vpop.eup %3585  ;;  %v2027_v63 = vmul.f32 1.442695, %v1997_v27  ;;  %v5327_v27 = vld [vmem:[#allocation17_spill] sm:$0xff] }
 0x9f4   :  { %2041 = vadd.xlane.f32.xlu1 %v4913_v4  ;;  %2039 = vadd.xlane.f32.xlu0 %v4915_v61  ;;  %v1976_v19 = vpop.xlane.xlu0 %1975  ;;  %v4920_v18 = vpop.eup %3587 }
 0x9f5   :  { %3595 = vpow2.f32 %v2027_v63  ;;  %v1995_v53 = vsub.f32 %v4876_v30, %v1976_v19  ;;  %v5328_v63 = vpack.i.bf16 %v5326_v25, %v5327_v27 }
 0x9f6   :  { %3597 = vpow2.f32 %v2017_v46 }
 0x9f7   :  { %v2023_v8 = vmul.f32 1.442695, %v1995_v53  ;;  %v4923_v41 = vpop.eup %3589 }
 0x9f8   :  { %2045 = vadd.xlane.f32.xlu0 %v4920_v18  ;;  %v2110_v29 = vpop.permute.xlu0 %2109 }
 0x9f9   :  { %3599 = vpow2.f32 %v2023_v8  ;;  %3169 = vmatprep.subr.bf16.mxu1 %v2110_v29 }
 0x9fa   :  { %3170 = vmatpush3.bf16.msra.mxu1 %v2110_v29 }
 0x9fb   :  { %v4925_v49 = vpop.eup %3591  ;;  %3171 = vmatprep.subr.bf16.mxu1 %v2112_v34 }
 0x9fc   :  { %2051 = vadd.xlane.f32.xlu0 %v4923_v41  ;;  %2047 = vadd.xlane.f32.xlu1 %v4925_v49  ;;  %v4929_v30 = vpop.eup %3593 }
 0x9fe   :  { %3172 = vmatpush3.bf16.msra.mxu1 %v2112_v34 }
 0x9ff   :  { %v4931_v12 = vpop.eup %3595 }
 0xa00   :  { %2053 = vadd.xlane.f32.xlu0 %v4929_v30  ;;  %2059 = vadd.xlane.f32.xlu1 %v4931_v12  ;;  %v4935_v6 = vpop.eup %3597 }
 0xa03   :  { %v4937_v13 = vpop.eup %3599 }
 0xa04   :  { %2049 = vadd.xlane.f32.xlu0 %v4935_v6  ;;  %2055 = vadd.xlane.f32.xlu1 %v4937_v13 }
 0xa15   :  { %2117 = vrot.lane.b32.xlu1 %v5309_v48, %s3655_s0 }
 0xa19   :  { %3259 = vrot.lane.b32.xlu1 %v5312_v57, %s3656_s6 }
 0xa1a   :  { %2115 = vrot.lane.b32.xlu0 %v5313_v23, %s3655_s0 }
 0xa1d   :  { %3264 = vrot.lane.b32.xlu1 %v3263_v2, %s3657_s30 }
 0xa1f   :  { %v1982_v42 = vpop.xlane.xlu1 %1981 }
 0xa20   :  { %v1998_v11 = vsub.f32 %v4884_v36, %v1982_v42  ;;  %v5323_v36 = vld [vmem:[#allocation2_spill] sm:$0xff] }
 0xa21   :  { %3269 = vrot.lane.b32.xlu1 %v3268_v20, %s3657_s30  ;;  %v5318_v20 = vld [vmem:[#allocation3_spill] sm:$0xff]  ;;  %v5325_v33 = vpack.i.bf16 %v5323_v36, %v5324_v38 }
 0xa22   :  { %v5319_v16 = vpack.i.bf16 %v5317_v1, %v5318_v20  ;;  %v2029_v2 = vmul.f32 1.442695, %v1998_v11 }
 0xa23   :  { %v1978_v39 = vpop.xlane.xlu1 %1977 }
 0xa24   :  { %v1996_v45 = vsub.f32 %v4888_v59, %v1978_v39 }
 0xa25   :  { %3279 = vrot.lane.b32.xlu1 %v5316_v50, %s3656_s6 }
 0xa26   :  { %v2025_v37 = vmul.f32 1.442695, %v1996_v45 }
 0xa27   :  { %v2114_v28 = vpop.permute.xlu1 %2113 }
 0xa28   :  { %3173 = vmatprep.subr.bf16.mxu1 %v2114_v28  ;;  %3601 = vpow2.f32 %v2025_v37 }
 0xa29   :  { %3289 = vrot.lane.b32.xlu1 %v3288_v60, %s3657_s30  ;;  %3174 = vmatpush3.bf16.msra.mxu1 %v2114_v28  ;;  %3603 = vpow2.f32 %v2029_v2  ;;  %v5322_v60 = vpack.i.bf16 %v5320_v43, %v5321_v56 }
 0xa2d   :  { %3299 = vrot.lane.b32.xlu1 %v5319_v16, %s3656_s6 }
 0xa32   :  { %v4971_v59 = vpop.eup %3601 }
 0xa33   :  { %v4974_v62 = vpop.eup %3603 }
 0xa39   :  { %2057 = vadd.xlane.f32.xlu0 %v4971_v59 }
 0xa3d   :  { %2061 = vadd.xlane.f32.xlu0 %v4974_v62 }
 0xa53   :  { %3254 = vrot.lane.b32.xlu0 %v5322_v60, %s3656_s6 }
 0xa57   :  { %3274 = vrot.lane.b32.xlu0 %v5325_v33, %s3656_s6 }
 0xa5b   :  { %3284 = vrot.lane.b32.xlu0 %v3283_v7, %s3657_s30 }
 0xa5f   :  { %3294 = vrot.lane.b32.xlu0 %v5328_v63, %s3656_s6 }
 0xa71   :  { %v2036_v46 = vpop.xlane.xlu1 %2035 }
 0xa75   :  { %v2032_v19 = vpop.xlane.xlu1 %2031 }
 0xa76   :  { %3605 = vrcp.f32 %v2032_v19 }
 0xa79   :  { %v2038_v53 = vpop.xlane.xlu1 %2037 }
 0xa7d   :  { %v2034_v8 = vpop.xlane.xlu1 %2033  ;;  %v2044_v29 = vpop.xlane.xlu0 %2043 }
 0xa7e   :  { %3607 = vrcp.f32 %v2034_v8 }
 0xa7f   :  { %3609 = vrcp.f32 %v2038_v53 }
 0xa80   :  { %v3606_v54 = vpop.eup %3605 }
 0xa81   :  { %v2040_v34 = vpop.xlane.xlu0 %2039  ;;  %v2042_v48 = vpop.xlane.xlu1 %2041  ;;  %v2064_v5 = vmul.f32 %v3606_v54, %v4897_v35 }
 0xa82   :  { %3611 = vrcp.f32 %v2042_v48 }
 0xa83   :  { %3613 = vrcp.f32 %v2040_v34 }
 0xa84   :  { %3615 = vrcp.f32 %v2036_v46 }
 0xa85   :  { %v2046_v0 = vpop.xlane.xlu0 %2045 }
 0xa86   :  { %3617 = vrcp.f32 %v2046_v0 }
 0xa88   :  { %v3608_v57 = vpop.eup %3607 }
 0xa89   :  { %v2048_v23 = vpop.xlane.xlu1 %2047  ;;  %v2052_v47 = vpop.xlane.xlu0 %2051  ;;  %v2066_v7 = vmul.f32 %v3608_v57, %v4905_v40 }
 0xa8a   :  { %v3610_v45 = vpop.eup %3609 }
 0xa8b   :  { %v2095_v42 = vpack.c.bf16 %v2066_v7, %v2064_v5  ;;  %v2070_v1 = vmul.f32 %v3610_v45, %v4900_v3 }
 0xa8c   :  { %v3612_v28 = vpop.eup %3611 }
 0xa8d   :  { %3179 = vmatprep.mubr.bf16.mxu1 %v2095_v42  ;;  %v2060_v39 = vpop.xlane.xlu1 %2059  ;;  %v2054_v26 = vpop.xlane.xlu0 %2053  ;;  %v2074_v16 = vmul.f32 %v3612_v28, %v4913_v4 }
 0xa8e   :  { %v3614_v37 = vpop.eup %3613 }
 0xa8f   :  { %v3616_v35 = vpop.eup %3615  ;;  %v2072_v20 = vmul.f32 %v3614_v37, %v4915_v61  ;;  %v5330_v37 = vld [vmem:[#allocation4_spill] sm:$0xff] }
 0xa90   :  { %v2068_v2 = vmul.f32 %v3616_v35, %v4893_v55  ;;  %v3618_v56 = vpop.eup %3617  ;;  %v5333_v35 = vld [vmem:[#allocation35_spill] sm:$0xff] }
 0xa91   :  { %v2056_v32 = vpop.xlane.xlu1 %2055  ;;  %v2050_v50 = vpop.xlane.xlu0 %2049  ;;  %v2097_v60 = vpack.c.bf16 %v2074_v16, %v2072_v20  ;;  %v2078_v3 = vmul.f32 %v3618_v56, %v4920_v18 }
 0xa92   :  { %3619 = vrcp.f32 %v2050_v50  ;;  %v2096_v43 = vpack.c.bf16 %v2070_v1, %v2068_v2 }
 0xa93   :  { %3621 = vrcp.f32 %v2044_v29 }
 0xa94   :  { %3623 = vrcp.f32 %v2048_v23  ;;  %v3379_v23 = vld [vmem:[%s5199_s4] sm:$0xff]  }
 0xa95   :  { %v2116_v11 = vpop.permute.xlu0 %2115  ;;  %v2118_v40 = vpop.permute.xlu1 %2117  ;;  %3625 = vrcp.f32 %v2054_v26 }
 0xa96   :  { %3175 = vmatprep.subr.bf16.mxu1 %v2116_v11  ;;  %3627 = vrcp.f32 %v2052_v47 }
 0xa97   :  { %3176 = vmatpush3.bf16.msra.mxu1 %v2116_v11  ;;  %3629 = vrcp.f32 %v2056_v32  ;;  %v5329_v11 = vld [vmem:[#allocation36_spill] sm:$0xff] }
 0xa98   :  { %3177 = vmatprep.subr.bf16.mxu1 %v2118_v40  ;;  %v5331_v9 = vpack.i.bf16 %v5329_v11, %v5330_v37 }
 0xa9b   :  { %3178 = vmatpush3.bf16.msra.mxu1 %v2118_v40 }
 0xa9c   :  { %v3620_v36 = vpop.eup %3619  ;;  %3195 = vmatprep.subr.bf16.mxu1 %v3379_v23 }
 0xa9d   :  { %v3622_v38 = vpop.eup %3621  ;;  %v2082_v25 = vmul.f32 %v3620_v36, %v4935_v6  ;;  %v3260_v36 = vpop.permute.xlu1 %3259 }
 0xa9e   :  { %3180 = vmatmul.mubr.bf16.vlgmr.msra.gmra.mrb[64].mxu1 %v2096_v43  ;;  %v3624_v33 = vpop.eup %3623  ;;  %v2076_v61 = vmul.f32 %v3622_v38, %v4907_v21  ;;  %v3262_v17 = vunpack.i.h.bf16 %v3260_v36  ;;  %v3261_v31 = vunpack.i.l.bf16 %v3260_v36 }
 0xa9f   :  { %3183 = vmatprep.mubr.bf16.mxu1 %v2097_v60  ;;  %v2080_v4 = vmul.f32 %v3624_v33, %v4925_v49  ;;  %v3626_v27 = vpop.eup %3625  ;;  %3196 = vmatpush3.bf16.msra.mxu1 %v3379_v23 }
 0xaa0   :  { %v2098_v55 = vpack.c.bf16 %v2078_v3, %v2076_v61  ;;  %v3628_v46 = vpop.eup %3627  ;;  %v2086_v19 = vmul.f32 %v3626_v27, %v4929_v30 }
 0xaa1   :  { %v2099_v63 = vpack.c.bf16 %v2082_v25, %v2080_v4  ;;  %v2084_v53 = vmul.f32 %v3628_v46, %v4923_v41  ;;  %v3630_v21 = vpop.eup %3629  ;;  %v3265_v38 = vpop.permute.xlu1 %3264  ;;  %v5335_v46 = vld [vmem:[#allocation21_spill] sm:$0xff] }
 0xaa2   :  { %v2088_v29 = vmul.f32 %v3630_v21, %v4937_v13  ;;  %v3380_v13 = vld [vmem:[%s5199_s4 + $0x8] sm:$0xff]   ;;  %v5337_v21 = vld [vmem:[#allocation22_spill] sm:$0xff] }
 0xaa3   :  { %v2100_v8 = vpack.c.bf16 %v2086_v19, %v2084_v53  ;;  %3197 = vmatprep.subr.bf16.mxu1 %v3380_v13  ;;  %v2419_v19 = vsel %vm455_vm1, %v5335_v46, %v3262_v17  ;;  %v5336_v53 = vld [vmem:[#allocation19_spill] sm:$0xff] }
 0xaa4   :  { %3198 = vmatpush3.bf16.msra.mxu1 %v3380_v13 }
 0xaa5   :  { %v3270_v33 = vpop.permute.xlu1 %3269 }
 0xaa6   :  { %3184 = vmatmul.mubr.bf16.gmra.mrb[68].mxu1 %v2098_v55  ;;  %v3272_v55 = vunpack.i.h.bf16 %v3270_v33  ;;  %v3271_v27 = vunpack.i.l.bf16 %v3270_v33 }
 0xaa7   :  { %3187 = vmatprep.mubr.bf16.mxu1 %v2099_v63 }
 0xaa9   :  { %v3280_v22 = vpop.permute.xlu1 %3279 }
 0xaaa   :  { %v3282_v23 = vunpack.i.h.bf16 %v3280_v22  ;;  %v3281_v13 = vunpack.i.l.bf16 %v3280_v22 }
 0xaad   :  { %v3290_v3 = vpop.permute.xlu1 %3289 }
 0xaae   :  { %3188 = vmatmul.mubr.bf16.gmra.mrb[72].mxu1 %v2100_v8  ;;  %v2418_v8 = vsel %vm455_vm1, %v5336_v53, %v3261_v31 }
 0xac6   :  { %v2058_v18 = vpop.xlane.xlu0 %2057 }
 0xac7   :  { %3631 = vrcp.f32 %v2058_v18  ;;  %v3267_v18 = vunpack.i.h.bf16 %v3265_v38 }
 0xac8   :  { %3633 = vrcp.f32 %v2060_v39 }
 0xaca   :  { %v2062_v6 = vpop.xlane.xlu0 %2061 }
 0xacb   :  { %3635 = vrcp.f32 %v2062_v6  ;;  %v3266_v6 = vunpack.i.l.bf16 %v3265_v38  ;;  %v5342_v38 = vld [vmem:[#allocation24_spill] sm:$0xff] }
 0xace   :  { %v3255_v58 = vpop.permute.xlu0 %3254 }
 0xacf   :  { %v3257_v61 = vunpack.i.h.bf16 %v3255_v58  ;;  %v3256_v4 = vunpack.i.l.bf16 %v3255_v58 }
 0xad1   :  { %v3632_v49 = vpop.eup %3631 }
 0xad2   :  { %v2090_v34 = vmul.f32 %v3632_v49, %v4971_v59  ;;  %v3634_v48 = vpop.eup %3633  ;;  %v2417_v49 = vsel %vm455_vm1, %v5337_v21, %v3257_v61 }
 0xad3   :  { %v2092_v41 = vmul.f32 %v3634_v48, %v4931_v12 }
 0xad4   :  { %v2101_v0 = vpack.c.bf16 %v2090_v34, %v2088_v29  ;;  %v5338_v29 = vld [vmem:[#allocation20_spill] sm:$0xff] }
 0xad5   :  { %v3636_v54 = vpop.eup %3635  ;;  %v2416_v34 = vsel %vm455_vm1, %v5338_v29, %v3256_v4  ;;  %v5343_v29 = vld [vmem:[#allocation29_spill] sm:$0xff] }
 0xad6   :  { %3191 = vmatprep.mubr.bf16.mxu1 %v2101_v0  ;;  %v2094_v30 = vmul.f32 %v3636_v54, %v4974_v62  ;;  %v2435_v0 = vsel %vm2432_vm2, %v2418_v8, %v3271_v27  ;;  %v2436_v54 = vsel %vm2432_vm2, %v2419_v19, %v3272_v55 }
 0xad8   :  { %v2102_v57 = vpack.c.bf16 %v2094_v30, %v2092_v41 }
 0xada   :  { %3192 = vmatmul.mubr.bf16.gmra.mrb[76].mxu1 %v2102_v57 }
 0xb71   :  { %v3181_v59 = vpop.f32.mrb[64].mxu1 }
 0xb72   :  { %v2161_v47 = vpop.f32.mrb[65].mxu1 }
 0xb73   :  { %v3182_v5 = vpop.f32.mrb[66].mxu1 }
 0xb74   :  { %v3303_v12 = vpack.i.bf16 %v3182_v5, %v3181_v59  ;;  %v2164_v7 = vpop.f32.mrb[67].mxu1 }
 0xb75   :  { %v3308_v62 = vpack.i.bf16 %v2164_v7, %v2161_v47  ;;  %v2433_v7 = vsel %vm2432_vm2, %v2416_v34, %v3266_v6  ;;  %v5344_v34 = vld [vmem:[#allocation27_spill] sm:$0xff] }
 0xb76   :  { %3304 = vrot.lane.b32.xlu1 %v3303_v12, %s3658_s11 }
 0xb77   :  { %3309 = vrot.lane.b32.xlu0 %v3308_v62, %s3658_s11  ;;  %v2434_v62 = vsel %vm2432_vm2, %v2417_v49, %v3267_v18 }
 0xb79   :  { %v3185_v42 = vpop.f32.mrb[68].mxu1 }
 0xb7a   :  { %3319 = vrot.lane.b32.xlu1 %v3318_v44, %s3657_s30  ;;  %v2177_v39 = vpop.f32.mrb[69].mxu1  ;;  %v5332_v44 = vld [vmem:[#allocation37_spill] sm:$0xff] }
 0xb7b   :  { %3314 = vrot.lane.b32.xlu0 %v3313_v14, %s3657_s30  ;;  %v3186_v26 = vpop.f32.mrb[70].mxu1  ;;  %v5334_v52 = vpack.i.bf16 %v5332_v44, %v5333_v35 }
 0xb7c   :  { %v3323_v32 = vpack.i.bf16 %v3186_v26, %v3185_v42  ;;  %v2180_v50 = vpop.f32.mrb[71].mxu1  ;;  %v3291_v42 = vunpack.i.l.bf16 %v3290_v3 }
 0xb7d   :  { %v3328_v45 = vpack.i.bf16 %v2180_v50, %v2177_v39 }
 0xb7e   :  { %3324 = vrot.lane.b32.xlu1 %v3323_v32, %s3658_s11 }
 0xb7f   :  { %3329 = vrot.lane.b32.xlu0 %v3328_v45, %s3658_s11  ;;  %v3292_v45 = vunpack.i.h.bf16 %v3290_v3 }
 0xb81   :  { %v3189_v28 = vpop.f32.mrb[72].mxu1 }
 0xb82   :  { %3339 = vrot.lane.b32.xlu1 %v5331_v9, %s3656_s6  ;;  %v2193_v10 = vpop.f32.mrb[73].mxu1 }
 0xb83   :  { %3334 = vrot.lane.b32.xlu0 %v5334_v52, %s3656_s6  ;;  %v3190_v15 = vpop.f32.mrb[74].mxu1 }
 0xb84   :  { %v3343_v14 = vpack.i.bf16 %v3190_v15, %v3189_v28  ;;  %v2196_v40 = vpop.f32.mrb[75].mxu1  ;;  %v5340_v15 = vld [vmem:[#allocation25_spill] sm:$0xff] }
 0xb85   :  { %v3348_v1 = vpack.i.bf16 %v2196_v40, %v2193_v10  ;;  %v5339_v10 = vld [vmem:[#allocation23_spill] sm:$0xff] }
 0xb86   :  { %3344 = vrot.lane.b32.xlu1 %v3343_v14, %s3658_s11  ;;  %v2422_v44 = vsel %vm455_vm1, %v5339_v10, %v3281_v13  ;;  %v2423_v14 = vsel %vm455_vm1, %v5340_v15, %v3282_v23 }
 0xb87   :  { %3349 = vrot.lane.b32.xlu0 %v3348_v1, %s3658_s11  ;;  %v2439_v40 = vsel %vm2432_vm2, %v2422_v44, %v3291_v42 }
 0xb8a   :  { %3359 = vrot.lane.b32.xlu1 %v3358_v24, %s3657_s30  ;;  %v3275_v24 = vpop.permute.xlu0 %3274 }
 0xb8b   :  { %3354 = vrot.lane.b32.xlu0 %v3353_v51, %s3657_s30  ;;  %v5047_v51 = vpop.permute.xlu1 %3299  ;;  %v3277_v37 = vunpack.i.h.bf16 %v3275_v24  ;;  %v3276_v9 = vunpack.i.l.bf16 %v3275_v24 }
 0xb8c   :  { %v3301_v31 = vunpack.i.l.bf16 %v5047_v51 }
 0xb8d   :  { %v2420_v33 = vsel %vm455_vm1, %v5342_v38, %v3276_v9 }
 0xb8e   :  { %v3285_v25 = vpop.permute.xlu0 %3284 }
 0xb8f   :  { %v3287_v35 = vunpack.i.h.bf16 %v3285_v25  ;;  %v3286_v52 = vunpack.i.l.bf16 %v3285_v25 }
 0xb91   :  { %v2437_v24 = vsel %vm2432_vm2, %v2420_v33, %v3286_v52 }
 0xb92   :  { %v5049_v63 = vpop.permute.xlu0 %3294 }
 0xb93   :  { %v3297_v46 = vunpack.i.h.bf16 %v5049_v63  ;;  %v3296_v19 = vunpack.i.l.bf16 %v5049_v63 }
 0xbad   :  { %v3193_v20 = vpop.f32.mrb[76].mxu1 }
 0xbae   :  { %v2209_v16 = vpop.f32.mrb[77].mxu1 }
 0xbaf   :  { %v3194_v2 = vpop.f32.mrb[78].mxu1 }
 0xbb0   :  { %v3368_v43 = vpack.i.bf16 %v3194_v2, %v3193_v20  ;;  %v2212_v56 = vpop.f32.mrb[79].mxu1  ;;  %v2440_v20 = vsel %vm2432_vm2, %v2423_v14, %v3292_v45 }
 0xbb1   :  { %v3363_v60 = vpack.i.bf16 %v2212_v56, %v2209_v16  ;;  %v3302_v16 = vunpack.i.h.bf16 %v5047_v51 }
 0xbb2   :  { %3369 = vrot.lane.b32.xlu1 %v3368_v43, %s3658_s11 }
 0xbb3   :  { %3364 = vrot.lane.b32.xlu0 %v3363_v60, %s3658_s11  ;;  %v5341_v60 = vld [vmem:[#allocation26_spill] sm:$0xff]  ;;  %v2427_v51 = vsel %vm455_vm1, %v5343_v29, %v3302_v16 }
 0xbb4   :  { %v2421_v36 = vsel %vm455_vm1, %v5341_v60, %v3277_v37  ;;  %v5350_v60 = vld [vmem:[#allocation32_spill] sm:$0xff] }
 0xbb5   :  { %v2438_v3 = vsel %vm2432_vm2, %v2421_v36, %v3287_v35 }
 0xbe8   :  { %v3305_v48 = vpop.permute.xlu1 %3304 }
 0xbe9   :  { %v3307_v41 = vunpack.i.h.bf16 %v3305_v48  ;;  %v3306_v30 = vunpack.i.l.bf16 %v3305_v48  ;;  %v3310_v57 = vpop.permute.xlu0 %3309  ;;  %v2426_v48 = vsel %vm455_vm1, %v5344_v34, %v3301_v31 }
 0xbea   :  { %v3312_v59 = vunpack.i.h.bf16 %v3310_v57  ;;  %v3311_v47 = vunpack.i.l.bf16 %v3310_v57 }
 0xbeb   :  { %v2453_v5 = vsel %vm2449_vm3, %v2436_v54, %v3307_v41  ;;  %v2452_v12 = vsel %vm2449_vm3, %v2435_v0, %v3306_v30  ;;  %v5345_v54 = vld [vmem:[#allocation30_spill] sm:$0xff]  ;;  %v5346_v41 = vld [vmem:[#allocation28_spill] sm:$0xff] }
 0xbec   :  { %v2467_v39 = vpack.c.bf16 %v2453_v5, %v2452_v12  ;;  %v2450_v26 = vsel %vm2449_vm3, %v2433_v7, %v3311_v47  ;;  %v2451_v32 = vsel %vm2449_vm3, %v2434_v62, %v3312_v59  ;;  %v3320_v50 = vpop.permute.xlu1 %3319  ;;  %v2425_v63 = vsel %vm455_vm1, %v5345_v54, %v3297_v46 }
 0xbed   :  { %v2466_v28 = vpack.c.bf16 %v2451_v32, %v2450_v26  ;;  %v3315_v11 = vpop.permute.xlu0 %3314  ;;  %v3322_v18 = vunpack.i.h.bf16 %v3320_v50  ;;  %v3321_v6 = vunpack.i.l.bf16 %v3320_v50  ;;  %v2424_v30 = vsel %vm455_vm1, %v5346_v41, %v3296_v19 }
 0xbee   :  { %v3317_v21 = vunpack.i.h.bf16 %v3315_v11  ;;  %v3316_v49 = vunpack.i.l.bf16 %v3315_v11 }
 0xbef   :  { %3199 = vmatprep.mubr.msk.bf16.mxu1 %vm83_vm0, %v2466_v28  ;;  %v2444_v59 = vsel %vm2432_vm2, %v2427_v51, %v3322_v18  ;;  %v2443_v47 = vsel %vm2432_vm2, %v2426_v48, %v3321_v6 }
 0xbf0   :  { %v3325_v1 = vpop.permute.xlu1 %3324  ;;  %3200 = vmatmul.mubr.msk.bf16.vlgmr.msra.gmra.mrb[80].mxu1 %vm83_vm0, %v2467_v39  ;;  %v2441_v7 = vsel %vm2432_vm2, %v2424_v30, %v3316_v49  ;;  %v2442_v62 = vsel %vm2432_vm2, %v2425_v63, %v3317_v21 }
 0xbf1   :  { %v3327_v2 = vunpack.i.h.bf16 %v3325_v1  ;;  %v3326_v43 = vunpack.i.l.bf16 %v3325_v1  ;;  %v3330_v56 = vpop.permute.xlu0 %3329 }
 0xbf2   :  { %v3332_v58 = vunpack.i.h.bf16 %v3330_v56  ;;  %v3331_v22 = vunpack.i.l.bf16 %v3330_v56 }
 0xbf3   :  { %v2457_v25 = vsel %vm2449_vm3, %v2440_v20, %v3327_v2  ;;  %v2456_v17 = vsel %vm2449_vm3, %v2439_v40, %v3326_v43  ;;  %v5347_v40 = vld [vmem:[#allocation33_spill] sm:$0xff]  ;;  %v5348_v20 = vld [vmem:[#allocation31_spill] sm:$0xff]  ;;  %v5349_v43 = vld [vmem:[#allocation34_spill] sm:$0xff] }
 0xbf4   :  { %v2469_v61 = vpack.c.bf16 %v2457_v25, %v2456_v17  ;;  %v2454_v4 = vsel %vm2449_vm3, %v2437_v24, %v3331_v22  ;;  %v2455_v55 = vsel %vm2449_vm3, %v2438_v3, %v3332_v58  ;;  %v3340_v27 = vpop.permute.xlu1 %3339 }
 0xbf5   :  { %v2468_v53 = vpack.c.bf16 %v2455_v55, %v2454_v4  ;;  %v3335_v8 = vpop.permute.xlu0 %3334  ;;  %v3342_v11 = vunpack.i.h.bf16 %v3340_v27  ;;  %v3341_v37 = vunpack.i.l.bf16 %v3340_v27 }
 0xbf6   :  { %v3337_v10 = vunpack.i.h.bf16 %v3335_v8  ;;  %v3336_v44 = vunpack.i.l.bf16 %v3335_v8 }
 0xbf7   :  { %3203 = vmatprep.mubr.msk.bf16.mxu1 %vm83_vm0, %v2468_v53  ;;  %v2431_v1 = vsel %vm455_vm1, %v5347_v40, %v3342_v11  ;;  %v2430_v16 = vsel %vm455_vm1, %v5348_v20, %v3341_v37  ;;  %v2700_v53 = vld [vmem:[%s5200_s5] ss:$0 sm:$0xff] }
 0xbf8   :  { %v3345_v0 = vpop.permute.xlu1 %3344  ;;  %3204 = vmatmul.mubr.msk.bf16.gmra.mrb[84].mxu1 %vm83_vm0, %v2469_v61  ;;  %v2429_v56 = vsel %vm455_vm1, %v5349_v43, %v3337_v10  ;;  %v2428_v36 = vsel %vm455_vm1, %v5350_v60, %v3336_v44 }
 0xbf9   :  { %v3347_v57 = vunpack.i.h.bf16 %v3345_v0  ;;  %v3346_v23 = vunpack.i.l.bf16 %v3345_v0  ;;  %v3350_v13 = vpop.permute.xlu0 %3349 }
 0xbfa   :  { %v3352_v5 = vunpack.i.h.bf16 %v3350_v13  ;;  %v3351_v12 = vunpack.i.l.bf16 %v3350_v13 }
 0xbfb   :  { %v2461_v42 = vsel %vm2449_vm3, %v2444_v59, %v3347_v57  ;;  %v2460_v39 = vsel %vm2449_vm3, %v2443_v47, %v3346_v23 }
 0xbfc   :  { %v2471_v26 = vpack.c.bf16 %v2461_v42, %v2460_v39  ;;  %v2458_v32 = vsel %vm2449_vm3, %v2441_v7, %v3351_v12  ;;  %v2459_v50 = vsel %vm2449_vm3, %v2442_v62, %v3352_v5  ;;  %v3360_v28 = vpop.permute.xlu1 %3359 }
 0xbfd   :  { %v2470_v45 = vpack.c.bf16 %v2459_v50, %v2458_v32  ;;  %v3355_v9 = vpop.permute.xlu0 %3354  ;;  %v3362_v35 = vunpack.i.h.bf16 %v3360_v28  ;;  %v3361_v52 = vunpack.i.l.bf16 %v3360_v28 }
 0xbfe   :  { %v3357_v15 = vunpack.i.h.bf16 %v3355_v9  ;;  %v3356_v14 = vunpack.i.l.bf16 %v3355_v9 }
 0xbff   :  { %3207 = vmatprep.mubr.msk.bf16.mxu1 %vm83_vm0, %v2470_v45  ;;  %v2448_v22 = vsel %vm2432_vm2, %v2431_v1, %v3362_v35  ;;  %v2447_v24 = vsel %vm2432_vm2, %v2430_v16, %v3361_v52 }
 0xc00   :  { %3208 = vmatmul.mubr.msk.bf16.gmra.mrb[88].mxu1 %vm83_vm0, %v2471_v26  ;;  %v2445_v17 = vsel %vm2432_vm2, %v2428_v36, %v3356_v14  ;;  %v2446_v31 = vsel %vm2432_vm2, %v2429_v56, %v3357_v15 }
 0xc24   :  { %v3370_v2 = vpop.permute.xlu1 %3369 }
 0xc25   :  { %v3372_v38 = vunpack.i.h.bf16 %v3370_v2  ;;  %v3371_v33 = vunpack.i.l.bf16 %v3370_v2  ;;  %v3365_v58 = vpop.permute.xlu0 %3364 }
 0xc26   :  { %v3367_v3 = vunpack.i.h.bf16 %v3365_v58  ;;  %v3366_v25 = vunpack.i.l.bf16 %v3365_v58 }
 0xc27   :  { %v2465_v61 = vsel %vm2449_vm3, %v2448_v22, %v3372_v38  ;;  %v2464_v4 = vsel %vm2449_vm3, %v2447_v24, %v3371_v33 }
 0xc28   :  { %v2473_v55 = vpack.c.bf16 %v2465_v61, %v2464_v4  ;;  %v2462_v27 = vsel %vm2449_vm3, %v2445_v17, %v3366_v25  ;;  %v2463_v46 = vsel %vm2449_vm3, %v2446_v31, %v3367_v3 }
 0xc29   :  { %v2472_v19 = vpack.c.bf16 %v2463_v46, %v2462_v27 }
 0xc2b   :  { %3211 = vmatprep.mubr.msk.bf16.mxu1 %vm83_vm0, %v2472_v19 }
 0xc2c   :  { %3212 = vmatmul.mubr.msk.bf16.gmra.mrb[92].mxu1 %vm83_vm0, %v2473_v55 }
 0xcc3   :  { %v3201_v8 = vpop.f32.mrb[80].mxu1 }
 0xcc4   :  { %v2564_v18 = vadd.f32 %v3201_v8, %v2700_v53  ;;  %v2555_v6 = vpop.f32.mrb[81].mxu1 }
 0xcc5   :  { %v2556_v21 = vadd.f32 %v2700_v53, %v2555_v6  ;;  %v3202_v49 = vpop.f32.mrb[82].mxu1 }
 0xcc6   :  { %2620 = vst.msk [vmem:[%s5201_s7 + $0x10] sm:$0xff] %vm83_vm0, %v2564_v18  ;;  %v2567_v29 = vadd.f32 %v3202_v49, %v2700_v53  ;;  %v2558_v51 = vpop.f32.mrb[83].mxu1 }
 0xcc7   :  { %2618 = vst.msk [vmem:[%s5201_s7] sm:$0xff] %vm83_vm0, %v2556_v21  ;;  %v2559_v34 = vadd.f32 %v2700_v53, %v2558_v51 }
 0xcc8   :  { %2621 = vst.msk [vmem:[%s5201_s7 + $0x18] sm:$0xff] %vm83_vm0, %v2567_v29 }
 0xcc9   :  { %2619 = vst.msk [vmem:[%s5201_s7 + $0x8] sm:$0xff] %vm83_vm0, %v2559_v34 }
 0xccb   :  { %v3205_v48 = vpop.f32.mrb[84].mxu1 }
 0xccc   :  { %v2580_v0 = vadd.f32 %v3205_v48, %v2700_v53  ;;  %v2571_v54 = vpop.f32.mrb[85].mxu1 }
 0xccd   :  { %v2572_v63 = vadd.f32 %v2700_v53, %v2571_v54  ;;  %v3206_v41 = vpop.f32.mrb[86].mxu1 }
 0xcce   :  { %2624 = vst.msk [vmem:[%s5201_s7 + $0x30] sm:$0xff] %vm83_vm0, %v2580_v0  ;;  %v2583_v30 = vadd.f32 %v3206_v41, %v2700_v53  ;;  %v2574_v57 = vpop.f32.mrb[87].mxu1 }
 0xccf   :  { %2622 = vst.msk [vmem:[%s5201_s7 + $0x20] sm:$0xff] %vm83_vm0, %v2572_v63  ;;  %v2575_v23 = vadd.f32 %v2700_v53, %v2574_v57 }
 0xcd0   :  { %2625 = vst.msk [vmem:[%s5201_s7 + $0x38] sm:$0xff] %vm83_vm0, %v2583_v30 }
 0xcd1   :  { %2623 = vst.msk [vmem:[%s5201_s7 + $0x28] sm:$0xff] %vm83_vm0, %v2575_v23 }
 0xcd3   :  { %v3209_v13 = vpop.f32.mrb[88].mxu1 }
 0xcd4   :  { %v2596_v59 = vadd.f32 %v3209_v13, %v2700_v53  ;;  %v2587_v47 = vpop.f32.mrb[89].mxu1 }
 0xcd5   :  { %v2588_v5 = vadd.f32 %v2700_v53, %v2587_v47  ;;  %v3210_v12 = vpop.f32.mrb[90].mxu1 }
 0xcd6   :  { %2628 = vst.msk [vmem:[%s5201_s7 + $0x50] sm:$0xff] %vm83_vm0, %v2596_v59  ;;  %v2599_v7 = vadd.f32 %v3210_v12, %v2700_v53  ;;  %v2590_v62 = vpop.f32.mrb[91].mxu1 }
 0xcd7   :  { %2626 = vst.msk [vmem:[%s5201_s7 + $0x40] sm:$0xff] %vm83_vm0, %v2588_v5  ;;  %v2591_v42 = vadd.f32 %v2700_v53, %v2590_v62 }
 0xcd8   :  { %2629 = vst.msk [vmem:[%s5201_s7 + $0x58] sm:$0xff] %vm83_vm0, %v2599_v7 }
 0xcd9   :  { %2627 = vst.msk [vmem:[%s5201_s7 + $0x48] sm:$0xff] %vm83_vm0, %v2591_v42 }
 0xcff   :  { %v3213_v39 = vpop.f32.mrb[92].mxu1 }
 0xd00   :  { %v2612_v26 = vadd.f32 %v3213_v39, %v2700_v53  ;;  %v2603_v32 = vpop.f32.mrb[93].mxu1 }
 0xd01   :  { %v2604_v50 = vadd.f32 %v2700_v53, %v2603_v32  ;;  %v3214_v45 = vpop.f32.mrb[94].mxu1 }
 0xd02   :  { %2632 = vst.msk [vmem:[%s5201_s7 + $0x70] sm:$0xff] %vm83_vm0, %v2612_v26  ;;  %v2615_v28 = vadd.f32 %v3214_v45, %v2700_v53  ;;  %v2606_v11 = vpop.f32.mrb[95].mxu1 }
 0xd03   :  { %2630 = vst.msk [vmem:[%s5201_s7 + $0x60] sm:$0xff] %vm83_vm0, %v2604_v50  ;;  %v2607_v37 = vadd.f32 %v2700_v53, %v2606_v11 }
 0xd04   :  { %2633 = vst.msk [vmem:[%s5201_s7 + $0x78] sm:$0xff] %vm83_vm0, %v2615_v28 }
 0xd05   :  { %2631 = vst.msk [vmem:[%s5201_s7 + $0x68] sm:$0xff] %vm83_vm0, %v2607_v37 }

</bundles_post_ra>
